<compile_context>
chip_gen: v7x
topology: tpu7x:2x2x1
jax: 0.10.0
libtpu: 0.0.40
codegen_flags: <defaults>
</compile_context>

<pallas_src>
import jax
import jax.numpy as jnp
import numpy as np
from jax import lax
from jax.experimental import pallas as pl
from jax.experimental.pallas import tpu as pltpu


def _round_up(x, m):
    return (x + m - 1) // m * m


def _pick_row_tile(H):
    for th in (64, 32, 16, 8):
        if H > th and H % th == 0:
            return th
    return H


def _make_fusion_kernel(C, W, TH, Wl, shifts):
    WC = W * C
    TH2 = TH + 2
    NS = len(shifts)

    def kernel(x_ref, wv1_ref, bv1_ref, wv2_ref, bv2_ref, o_ref,
               acc_ref, hbuf_ref):
        # x_ref   : (TH+4, Wl) f32  row-tile of the padded lane-packed image
        # wv*_ref : (WVR, WC)  f32  per-lane folded conv weights (rows dy*NS+k)
        # bv*_ref : (1, WC)    f32  per-lane bias
        # o_ref   : (TH, WC)   f32  output tile (lane = col*C + channel)
        # acc_ref : (TH+2, WC) f32  conv1 accumulator (VMEM scratch)
        # hbuf_ref: (TH+2, Wl) f32  zero-bordered ReLU intermediate (scratch)
        t = pl.program_id(1)

        xa = x_ref[...]
        wv1 = wv1_ref[...]
        wv2 = wv2_ref[...]

        # ---- conv1 + bias, accumulated in a f32 VMEM scratch -----------------
        acc_ref[...] = jnp.broadcast_to(bv1_ref[...], (TH2, WC))
        for dy in range(3):
            for ks, s in enumerate(shifts):
                row = dy * NS + ks
                acc_ref[...] += (wv1[row:row + 1, :] *
                                 xa[dy:dy + TH2, 2 * C + s:2 * C + s + WC])

        # ---- ReLU into the zero-bordered intermediate buffer -----------------
        hbuf_ref[...] = jnp.zeros((TH2, Wl), jnp.float32)
        hbuf_ref[pl.ds(0, TH2), pl.ds(2 * C, WC)] = jnp.maximum(acc_ref[...], 0.0)

        # Intermediate rows that fall outside the image are conv padding: zero
        # them on the edge tiles (done every step -> megacore-safe scratch).
        @pl.when(t == 0)
        def _():
            hbuf_ref[pl.ds(0, 1), :] = jnp.zeros((1, Wl), jnp.float32)

        @pl.when(t == pl.num_programs(1) - 1)
        def _():
            hbuf_ref[pl.ds(TH2 - 1, 1), :] = jnp.zeros((1, Wl), jnp.float32)

        hb = hbuf_ref[...]

        # ---- conv2 + bias + residual, accumulated into the output block ------
        o_ref[...] = (jnp.broadcast_to(bv2_ref[...], (TH, WC)) +
                      xa[2:2 + TH, 2 * C:2 * C + WC])
        for dy in range(3):
            for ks, s in enumerate(shifts):
                row = dy * NS + ks
                o_ref[...] += (wv2[row:row + 1, :] *
                               hb[dy:dy + TH, 2 * C + s:2 * C + s + WC])

    return kernel


@jax.jit
def fusion_pallas(x_nchw, w1, b1, w2, b2):
    """x_nchw: (N, C, H, W) f32; w1/w2 HWIO (3, 3, C, C); b1/b2 (C,)."""
    N, C, H, W = x_nchw.shape
    WC = W * C
    TH = _pick_row_tile(H)
    n_tiles = H // TH
    Wl = _round_up((W + 4) * C, 128)          # lane width (cols*C + halo, padded)
    NS = 4 * C - 1
    shifts = list(range(-(2 * C - 1), 2 * C))
    WVR = _round_up(3 * NS, 8)

    # ---- trace-time constants: (shift, lane) -> weight-index gather + mask ---
    idx = np.zeros((NS, WC), np.int32)
    msk = np.zeros((NS, WC), np.float32)
    for ks, s in enumerate(shifts):
        for j in range(WC):
            co = j % C
            v = s + C + co                     # = dx*C + ci if the tap is real
            if 0 <= v < 3 * C:
                dx, ci = divmod(v, C)
                idx[ks, j] = dx * C * C + ci * C + co
                msk[ks, j] = 1.0

    def fold_weights(w):                       # (3,3,C,C) HWIO -> (WVR, WC)
        wf = w.astype(jnp.float32).reshape(3, 3 * C * C)
        g = wf[:, idx.reshape(-1)].reshape(3, NS, WC) * msk[None]
        g = g.reshape(3 * NS, WC)
        return jnp.pad(g, ((0, WVR - 3 * NS), (0, 0)))

    def fold_bias(b):
        return jnp.tile(b.astype(jnp.float32), W).reshape(1, WC)

    # ---- compact, lane-packed, halo-padded image: lane = col*C + channel -----
    xg = jnp.transpose(x_nchw, (0, 2, 3, 1)).astype(jnp.float32)    # NHWC
    xg = jnp.pad(xg, ((0, 0), (2, 2), (2, 2), (0, 0)))              # 2-halo rows/cols
    xg = xg.reshape(N, H + 4, (W + 4) * C)
    xg = jnp.pad(xg, ((0, 0), (0, 0), (0, Wl - (W + 4) * C)))
    # Row tiles carry their own 2-row halo (duplicated here; no in-kernel gather).
    row_idx = (TH * np.arange(n_tiles)[:, None] +
               np.arange(TH + 4)[None, :]).reshape(-1)
    xt = jnp.take(xg, jnp.asarray(row_idx), axis=1)
    xt = xt.reshape(N, n_tiles, TH + 4, Wl)

    kernel = _make_fusion_kernel(C, W, TH, Wl, shifts)

    flops = 4 * 9 * C * C * H * W * N          # 2 convs x (mul+add) per MAC
    bytes_accessed = (xt.size + N * n_tiles * TH * WC +
                      2 * (WVR * WC + WC)) * 4

    out_tiled = pl.pallas_call(
        kernel,
        out_shape=jax.ShapeDtypeStruct((N, n_tiles, TH, WC), jnp.float32),
        grid_spec=pltpu.PrefetchScalarGridSpec(
            num_scalar_prefetch=0,
            grid=(N, n_tiles),
            in_specs=[
                pl.BlockSpec((None, None, TH + 4, Wl), lambda n, t: (n, t, 0, 0)),
                pl.BlockSpec((WVR, WC), lambda n, t: (0, 0)),
                pl.BlockSpec((1, WC), lambda n, t: (0, 0)),
                pl.BlockSpec((WVR, WC), lambda n, t: (0, 0)),
                pl.BlockSpec((1, WC), lambda n, t: (0, 0)),
            ],
            out_specs=pl.BlockSpec((None, None, TH, WC),
                                   lambda n, t: (n, t, 0, 0)),
            scratch_shapes=[
                pltpu.VMEM((TH + 2, WC), jnp.float32),
                pltpu.VMEM((TH + 2, Wl), jnp.float32),
            ],
        ),
        compiler_params=pltpu.CompilerParams(
            dimension_semantics=("parallel", "parallel"),
            vmem_limit_bytes=32 * 1024 * 1024),
        cost_estimate=pl.CostEstimate(flops=flops, transcendentals=0,
                                      bytes_accessed=bytes_accessed),
    )(xt, fold_weights(w1), fold_bias(b1), fold_weights(w2), fold_bias(b2))

    out = out_tiled.reshape(N, H, W, C)
    return jnp.transpose(out, (0, 3, 1, 2))


def _reference(x_nchw, w1, b1, w2, b2):
    """Pure-JAX reference (NHWC conv), for verification."""
    x = jnp.transpose(x_nchw, (0, 2, 3, 1))
    dn = ("NHWC", "HWIO", "NHWC")
    h = lax.conv_general_dilated(x, w1, (1, 1), "SAME", dimension_numbers=dn)
    h = jnp.maximum(h + b1[None, None, None, :], 0.0)
    y = lax.conv_general_dilated(h, w2, (1, 1), "SAME", dimension_numbers=dn)
    y = y + b2[None, None, None, :] + x
    return jnp.transpose(y, (0, 3, 1, 2))


if __name__ == "__main__":
    N, C, H, W = 2, 4, 16, 16
    key = jax.random.PRNGKey(0)
    kx, k1, k2, k3, k4 = jax.random.split(key, 5)

    x = jax.random.normal(kx, (N, C, H, W), dtype=jnp.float32)
    # Conv2d(C, C, 3) parameters (deterministic synthetic init), HWIO layout.
    w1 = jax.random.normal(k1, (3, 3, C, C), dtype=jnp.float32) * 0.1
    b1 = jax.random.normal(k2, (C,), dtype=jnp.float32) * 0.1
    w2 = jax.random.normal(k3, (3, 3, C, C), dtype=jnp.float32) * 0.1
    b2 = jax.random.normal(k4, (C,), dtype=jnp.float32) * 0.1

    y = jax.block_until_ready(fusion_pallas(x, w1, b1, w2, b2))
    y_ref = jax.block_until_ready(_reference(x, w1, b1, w2, b2))
    np.testing.assert_allclose(np.asarray(y), np.asarray(y_ref),
                               rtol=1e-4, atol=1e-4)
    print("KERNEL_OK")
</pallas_src>

<mosaic_0001>
module attributes {stable_mosaic.version = 11 : i64} {
  func.func @kernel(%arg0: i32, %arg1: i32, %arg2: memref<1x1x12x128xf32, #tpu.memory_space<vmem>>, %arg3: memref<48x64xf32, #tpu.memory_space<vmem>>, %arg4: memref<1x64xf32, #tpu.memory_space<vmem>>, %arg5: memref<48x64xf32, #tpu.memory_space<vmem>>, %arg6: memref<1x64xf32, #tpu.memory_space<vmem>>, %arg7: memref<1x1x8x64xf32, #tpu.memory_space<vmem>>, %arg8: memref<10x64xf32, #tpu.memory_space<vmem>>, %arg9: memref<10x128xf32, #tpu.memory_space<vmem>>) attributes {dimension_semantics = [#tpu.dimension_semantics<parallel>, #tpu.dimension_semantics<parallel>], iteration_bounds = array<i64: 2, 2>, scalar_prefetch = 0 : i64, scratch_operands = 2 : i64, tpu.core_type = #tpu.core_type<tc>, window_params = [{transform_indices = @transform_0, window_bounds = array<i64: 1, 1, 12, 128>}, {pipeline_mode = #tpu.pipeline_mode<synchronous>, transform_indices = @transform_1, window_bounds = array<i64: 48, 64>}, {pipeline_mode = #tpu.pipeline_mode<synchronous>, transform_indices = @transform_2, window_bounds = array<i64: 1, 64>}, {pipeline_mode = #tpu.pipeline_mode<synchronous>, transform_indices = @transform_3, window_bounds = array<i64: 48, 64>}, {pipeline_mode = #tpu.pipeline_mode<synchronous>, transform_indices = @transform_4, window_bounds = array<i64: 1, 64>}, {transform_indices = @transform_5, window_bounds = array<i64: 1, 1, 8, 64>}]} {
    %c0 = arith.constant 0 : index
    %c0_0 = arith.constant 0 : index
    %c0_1 = arith.constant 0 : index
    %c0_2 = arith.constant 0 : index
    %0 = vector.load %arg2[%c0, %c0_0, %c0_1, %c0_2] : memref<1x1x12x128xf32, #tpu.memory_space<vmem>>, vector<1x1x12x128xf32>
    %1 = vector.shape_cast %0 : vector<1x1x12x128xf32> to vector<12x128xf32>
    %c0_3 = arith.constant 0 : index
    %c0_4 = arith.constant 0 : index
    %2 = vector.load %arg3[%c0_3, %c0_4] : memref<48x64xf32, #tpu.memory_space<vmem>>, vector<48x64xf32>
    %c0_5 = arith.constant 0 : index
    %c0_6 = arith.constant 0 : index
    %3 = vector.load %arg5[%c0_5, %c0_6] : memref<48x64xf32, #tpu.memory_space<vmem>>, vector<48x64xf32>
    %c0_7 = arith.constant 0 : index
    %c0_8 = arith.constant 0 : index
    %4 = vector.load %arg4[%c0_7, %c0_8] : memref<1x64xf32, #tpu.memory_space<vmem>>, vector<1x64xf32>
    %5 = vector.shape_cast %4 : vector<1x64xf32> to vector<1x64xf32>
    %6 = vector.broadcast %5 : vector<1x64xf32> to vector<10x64xf32>
    %c0_9 = arith.constant 0 : index
    %c0_10 = arith.constant 0 : index
    %7 = vector.load %arg8[%c0_9, %c0_10] : memref<10x64xf32, #tpu.memory_space<vmem>>, vector<10x64xf32>
    tpu.vector_store %arg8[%c0_9, %c0_10], %6 {strides = array<i32>} : memref<10x64xf32, #tpu.memory_space<vmem>>, vector<10x64xf32>,
    %c0_11 = arith.constant 0 : index
    %c0_12 = arith.constant 0 : index
    %8 = vector.load %arg8[%c0_11, %c0_12] : memref<10x64xf32, #tpu.memory_space<vmem>>, vector<10x64xf32>
    %9 = vector.extract_strided_slice %2 {offsets = [0, 0], sizes = [1, 64], strides = [1, 1]} : vector<48x64xf32> to vector<1x64xf32>
    %10 = vector.extract_strided_slice %1 {offsets = [0, 1], sizes = [10, 64], strides = [1, 1]} : vector<12x128xf32> to vector<10x64xf32>
    %11 = vector.broadcast %9 : vector<1x64xf32> to vector<10x64xf32>
    %12 = arith.mulf %11, %10 : vector<10x64xf32>
    %13 = arith.addf %8, %12 : vector<10x64xf32>
    %c0_13 = arith.constant 0 : index
    %c0_14 = arith.constant 0 : index
    %14 = vector.load %arg8[%c0_13, %c0_14] : memref<10x64xf32, #tpu.memory_space<vmem>>, vector<10x64xf32>
    tpu.vector_store %arg8[%c0_13, %c0_14], %13 {strides = array<i32>} : memref<10x64xf32, #tpu.memory_space<vmem>>, vector<10x64xf32>,
    %c0_15 = arith.constant 0 : index
    %c0_16 = arith.constant 0 : index
    %15 = vector.load %arg8[%c0_15, %c0_16] : memref<10x64xf32, #tpu.memory_space<vmem>>, vector<10x64xf32>
    %16 = vector.extract_strided_slice %2 {offsets = [1, 0], sizes = [1, 64], strides = [1, 1]} : vector<48x64xf32> to vector<1x64xf32>
    %17 = vector.extract_strided_slice %1 {offsets = [0, 2], sizes = [10, 64], strides = [1, 1]} : vector<12x128xf32> to vector<10x64xf32>
    %18 = vector.broadcast %16 : vector<1x64xf32> to vector<10x64xf32>
    %19 = arith.mulf %18, %17 : vector<10x64xf32>
    %20 = arith.addf %15, %19 : vector<10x64xf32>
    %c0_17 = arith.constant 0 : index
    %c0_18 = arith.constant 0 : index
    %21 = vector.load %arg8[%c0_17, %c0_18] : memref<10x64xf32, #tpu.memory_space<vmem>>, vector<10x64xf32>
    tpu.vector_store %arg8[%c0_17, %c0_18], %20 {strides = array<i32>} : memref<10x64xf32, #tpu.memory_space<vmem>>, vector<10x64xf32>,
    %c0_19 = arith.constant 0 : index
    %c0_20 = arith.constant 0 : index
    %22 = vector.load %arg8[%c0_19, %c0_20] : memref<10x64xf32, #tpu.memory_space<vmem>>, vector<10x64xf32>
    %23 = vector.extract_strided_slice %2 {offsets = [2, 0], sizes = [1, 64], strides = [1, 1]} : vector<48x64xf32> to vector<1x64xf32>
    %24 = vector.extract_strided_slice %1 {offsets = [0, 3], sizes = [10, 64], strides = [1, 1]} : vector<12x128xf32> to vector<10x64xf32>
    %25 = vector.broadcast %23 : vector<1x64xf32> to vector<10x64xf32>
    %26 = arith.mulf %25, %24 : vector<10x64xf32>
    %27 = arith.addf %22, %26 : vector<10x64xf32>
    %c0_21 = arith.constant 0 : index
    %c0_22 = arith.constant 0 : index
    %28 = vector.load %arg8[%c0_21, %c0_22] : memref<10x64xf32, #tpu.memory_space<vmem>>, vector<10x64xf32>
    tpu.vector_store %arg8[%c0_21, %c0_22], %27 {strides = array<i32>} : memref<10x64xf32, #tpu.memory_space<vmem>>, vector<10x64xf32>,
    %c0_23 = arith.constant 0 : index
    %c0_24 = arith.constant 0 : index
    %29 = vector.load %arg8[%c0_23, %c0_24] : memref<10x64xf32, #tpu.memory_space<vmem>>, vector<10x64xf32>
    %30 = vector.extract_strided_slice %2 {offsets = [3, 0], sizes = [1, 64], strides = [1, 1]} : vector<48x64xf32> to vector<1x64xf32>
    %31 = vector.extract_strided_slice %1 {offsets = [0, 4], sizes = [10, 64], strides = [1, 1]} : vector<12x128xf32> to vector<10x64xf32>
    %32 = vector.broadcast %30 : vector<1x64xf32> to vector<10x64xf32>
    %33 = arith.mulf %32, %31 : vector<10x64xf32>
    %34 = arith.addf %29, %33 : vector<10x64xf32>
    %c0_25 = arith.constant 0 : index
    %c0_26 = arith.constant 0 : index
    %35 = vector.load %arg8[%c0_25, %c0_26] : memref<10x64xf32, #tpu.memory_space<vmem>>, vector<10x64xf32>
    tpu.vector_store %arg8[%c0_25, %c0_26], %34 {strides = array<i32>} : memref<10x64xf32, #tpu.memory_space<vmem>>, vector<10x64xf32>,
    %c0_27 = arith.constant 0 : index
    %c0_28 = arith.constant 0 : index
    %36 = vector.load %arg8[%c0_27, %c0_28] : memref<10x64xf32, #tpu.memory_space<vmem>>, vector<10x64xf32>
    %37 = vector.extract_strided_slice %2 {offsets = [4, 0], sizes = [1, 64], strides = [1, 1]} : vector<48x64xf32> to vector<1x64xf32>
    %38 = vector.extract_strided_slice %1 {offsets = [0, 5], sizes = [10, 64], strides = [1, 1]} : vector<12x128xf32> to vector<10x64xf32>
    %39 = vector.broadcast %37 : vector<1x64xf32> to vector<10x64xf32>
    %40 = arith.mulf %39, %38 : vector<10x64xf32>
    %41 = arith.addf %36, %40 : vector<10x64xf32>
    %c0_29 = arith.constant 0 : index
    %c0_30 = arith.constant 0 : index
    %42 = vector.load %arg8[%c0_29, %c0_30] : memref<10x64xf32, #tpu.memory_space<vmem>>, vector<10x64xf32>
    tpu.vector_store %arg8[%c0_29, %c0_30], %41 {strides = array<i32>} : memref<10x64xf32, #tpu.memory_space<vmem>>, vector<10x64xf32>,
    %c0_31 = arith.constant 0 : index
    %c0_32 = arith.constant 0 : index
    %43 = vector.load %arg8[%c0_31, %c0_32] : memref<10x64xf32, #tpu.memory_space<vmem>>, vector<10x64xf32>
    %44 = vector.extract_strided_slice %2 {offsets = [5, 0], sizes = [1, 64], strides = [1, 1]} : vector<48x64xf32> to vector<1x64xf32>
    %45 = vector.extract_strided_slice %1 {offsets = [0, 6], sizes = [10, 64], strides = [1, 1]} : vector<12x128xf32> to vector<10x64xf32>
    %46 = vector.broadcast %44 : vector<1x64xf32> to vector<10x64xf32>
    %47 = arith.mulf %46, %45 : vector<10x64xf32>
    %48 = arith.addf %43, %47 : vector<10x64xf32>
    %c0_33 = arith.constant 0 : index
    %c0_34 = arith.constant 0 : index
    %49 = vector.load %arg8[%c0_33, %c0_34] : memref<10x64xf32, #tpu.memory_space<vmem>>, vector<10x64xf32>
    tpu.vector_store %arg8[%c0_33, %c0_34], %48 {strides = array<i32>} : memref<10x64xf32, #tpu.memory_space<vmem>>, vector<10x64xf32>,
    %c0_35 = arith.constant 0 : index
    %c0_36 = arith.constant 0 : index
    %50 = vector.load %arg8[%c0_35, %c0_36] : memref<10x64xf32, #tpu.memory_space<vmem>>, vector<10x64xf32>
    %51 = vector.extract_strided_slice %2 {offsets = [6, 0], sizes = [1, 64], strides = [1, 1]} : vector<48x64xf32> to vector<1x64xf32>
    %52 = vector.extract_strided_slice %1 {offsets = [0, 7], sizes = [10, 64], strides = [1, 1]} : vector<12x128xf32> to vector<10x64xf32>
    %53 = vector.broadcast %51 : vector<1x64xf32> to vector<10x64xf32>
    %54 = arith.mulf %53, %52 : vector<10x64xf32>
    %55 = arith.addf %50, %54 : vector<10x64xf32>
    %c0_37 = arith.constant 0 : index
    %c0_38 = arith.constant 0 : index
    %56 = vector.load %arg8[%c0_37, %c0_38] : memref<10x64xf32, #tpu.memory_space<vmem>>, vector<10x64xf32>
    tpu.vector_store %arg8[%c0_37, %c0_38], %55 {strides = array<i32>} : memref<10x64xf32, #tpu.memory_space<vmem>>, vector<10x64xf32>,
    %c0_39 = arith.constant 0 : index
    %c0_40 = arith.constant 0 : index
    %57 = vector.load %arg8[%c0_39, %c0_40] : memref<10x64xf32, #tpu.memory_space<vmem>>, vector<10x64xf32>
    %58 = vector.extract_strided_slice %2 {offsets = [7, 0], sizes = [1, 64], strides = [1, 1]} : vector<48x64xf32> to vector<1x64xf32>
    %59 = vector.extract_strided_slice %1 {offsets = [0, 8], sizes = [10, 64], strides = [1, 1]} : vector<12x128xf32> to vector<10x64xf32>
    %60 = vector.broadcast %58 : vector<1x64xf32> to vector<10x64xf32>
    %61 = arith.mulf %60, %59 : vector<10x64xf32>
    %62 = arith.addf %57, %61 : vector<10x64xf32>
    %c0_41 = arith.constant 0 : index
    %c0_42 = arith.constant 0 : index
    %63 = vector.load %arg8[%c0_41, %c0_42] : memref<10x64xf32, #tpu.memory_space<vmem>>, vector<10x64xf32>
    tpu.vector_store %arg8[%c0_41, %c0_42], %62 {strides = array<i32>} : memref<10x64xf32, #tpu.memory_space<vmem>>, vector<10x64xf32>,
    %c0_43 = arith.constant 0 : index
    %c0_44 = arith.constant 0 : index
    %64 = vector.load %arg8[%c0_43, %c0_44] : memref<10x64xf32, #tpu.memory_space<vmem>>, vector<10x64xf32>
    %65 = vector.extract_strided_slice %2 {offsets = [8, 0], sizes = [1, 64], strides = [1, 1]} : vector<48x64xf32> to vector<1x64xf32>
    %66 = vector.extract_strided_slice %1 {offsets = [0, 9], sizes = [10, 64], strides = [1, 1]} : vector<12x128xf32> to vector<10x64xf32>
    %67 = vector.broadcast %65 : vector<1x64xf32> to vector<10x64xf32>
    %68 = arith.mulf %67, %66 : vector<10x64xf32>
    %69 = arith.addf %64, %68 : vector<10x64xf32>
    %c0_45 = arith.constant 0 : index
    %c0_46 = arith.constant 0 : index
    %70 = vector.load %arg8[%c0_45, %c0_46] : memref<10x64xf32, #tpu.memory_space<vmem>>, vector<10x64xf32>
    tpu.vector_store %arg8[%c0_45, %c0_46], %69 {strides = array<i32>} : memref<10x64xf32, #tpu.memory_space<vmem>>, vector<10x64xf32>,
    %c0_47 = arith.constant 0 : index
    %c0_48 = arith.constant 0 : index
    %71 = vector.load %arg8[%c0_47, %c0_48] : memref<10x64xf32, #tpu.memory_space<vmem>>, vector<10x64xf32>
    %72 = vector.extract_strided_slice %2 {offsets = [9, 0], sizes = [1, 64], strides = [1, 1]} : vector<48x64xf32> to vector<1x64xf32>
    %73 = vector.extract_strided_slice %1 {offsets = [0, 10], sizes = [10, 64], strides = [1, 1]} : vector<12x128xf32> to vector<10x64xf32>
    %74 = vector.broadcast %72 : vector<1x64xf32> to vector<10x64xf32>
    %75 = arith.mulf %74, %73 : vector<10x64xf32>
    %76 = arith.addf %71, %75 : vector<10x64xf32>
    %c0_49 = arith.constant 0 : index
    %c0_50 = arith.constant 0 : index
    %77 = vector.load %arg8[%c0_49, %c0_50] : memref<10x64xf32, #tpu.memory_space<vmem>>, vector<10x64xf32>
    tpu.vector_store %arg8[%c0_49, %c0_50], %76 {strides = array<i32>} : memref<10x64xf32, #tpu.memory_space<vmem>>, vector<10x64xf32>,
    %c0_51 = arith.constant 0 : index
    %c0_52 = arith.constant 0 : index
    %78 = vector.load %arg8[%c0_51, %c0_52] : memref<10x64xf32, #tpu.memory_space<vmem>>, vector<10x64xf32>
    %79 = vector.extract_strided_slice %2 {offsets = [10, 0], sizes = [1, 64], strides = [1, 1]} : vector<48x64xf32> to vector<1x64xf32>
    %80 = vector.extract_strided_slice %1 {offsets = [0, 11], sizes = [10, 64], strides = [1, 1]} : vector<12x128xf32> to vector<10x64xf32>
    %81 = vector.broadcast %79 : vector<1x64xf32> to vector<10x64xf32>
    %82 = arith.mulf %81, %80 : vector<10x64xf32>
    %83 = arith.addf %78, %82 : vector<10x64xf32>
    %c0_53 = arith.constant 0 : index
    %c0_54 = arith.constant 0 : index
    %84 = vector.load %arg8[%c0_53, %c0_54] : memref<10x64xf32, #tpu.memory_space<vmem>>, vector<10x64xf32>
    tpu.vector_store %arg8[%c0_53, %c0_54], %83 {strides = array<i32>} : memref<10x64xf32, #tpu.memory_space<vmem>>, vector<10x64xf32>,
    %c0_55 = arith.constant 0 : index
    %c0_56 = arith.constant 0 : index
    %85 = vector.load %arg8[%c0_55, %c0_56] : memref<10x64xf32, #tpu.memory_space<vmem>>, vector<10x64xf32>
    %86 = vector.extract_strided_slice %2 {offsets = [11, 0], sizes = [1, 64], strides = [1, 1]} : vector<48x64xf32> to vector<1x64xf32>
    %87 = vector.extract_strided_slice %1 {offsets = [0, 12], sizes = [10, 64], strides = [1, 1]} : vector<12x128xf32> to vector<10x64xf32>
    %88 = vector.broadcast %86 : vector<1x64xf32> to vector<10x64xf32>
    %89 = arith.mulf %88, %87 : vector<10x64xf32>
    %90 = arith.addf %85, %89 : vector<10x64xf32>
    %c0_57 = arith.constant 0 : index
    %c0_58 = arith.constant 0 : index
    %91 = vector.load %arg8[%c0_57, %c0_58] : memref<10x64xf32, #tpu.memory_space<vmem>>, vector<10x64xf32>
    tpu.vector_store %arg8[%c0_57, %c0_58], %90 {strides = array<i32>} : memref<10x64xf32, #tpu.memory_space<vmem>>, vector<10x64xf32>,
    %c0_59 = arith.constant 0 : index
    %c0_60 = arith.constant 0 : index
    %92 = vector.load %arg8[%c0_59, %c0_60] : memref<10x64xf32, #tpu.memory_space<vmem>>, vector<10x64xf32>
    %93 = vector.extract_strided_slice %2 {offsets = [12, 0], sizes = [1, 64], strides = [1, 1]} : vector<48x64xf32> to vector<1x64xf32>
    %94 = vector.extract_strided_slice %1 {offsets = [0, 13], sizes = [10, 64], strides = [1, 1]} : vector<12x128xf32> to vector<10x64xf32>
    %95 = vector.broadcast %93 : vector<1x64xf32> to vector<10x64xf32>
    %96 = arith.mulf %95, %94 : vector<10x64xf32>
    %97 = arith.addf %92, %96 : vector<10x64xf32>
    %c0_61 = arith.constant 0 : index
    %c0_62 = arith.constant 0 : index
    %98 = vector.load %arg8[%c0_61, %c0_62] : memref<10x64xf32, #tpu.memory_space<vmem>>, vector<10x64xf32>
    tpu.vector_store %arg8[%c0_61, %c0_62], %97 {strides = array<i32>} : memref<10x64xf32, #tpu.memory_space<vmem>>, vector<10x64xf32>,
    %c0_63 = arith.constant 0 : index
    %c0_64 = arith.constant 0 : index
    %99 = vector.load %arg8[%c0_63, %c0_64] : memref<10x64xf32, #tpu.memory_space<vmem>>, vector<10x64xf32>
    %100 = vector.extract_strided_slice %2 {offsets = [13, 0], sizes = [1, 64], strides = [1, 1]} : vector<48x64xf32> to vector<1x64xf32>
    %101 = vector.extract_strided_slice %1 {offsets = [0, 14], sizes = [10, 64], strides = [1, 1]} : vector<12x128xf32> to vector<10x64xf32>
    %102 = vector.broadcast %100 : vector<1x64xf32> to vector<10x64xf32>
    %103 = arith.mulf %102, %101 : vector<10x64xf32>
    %104 = arith.addf %99, %103 : vector<10x64xf32>
    %c0_65 = arith.constant 0 : index
    %c0_66 = arith.constant 0 : index
    %105 = vector.load %arg8[%c0_65, %c0_66] : memref<10x64xf32, #tpu.memory_space<vmem>>, vector<10x64xf32>
    tpu.vector_store %arg8[%c0_65, %c0_66], %104 {strides = array<i32>} : memref<10x64xf32, #tpu.memory_space<vmem>>, vector<10x64xf32>,
    %c0_67 = arith.constant 0 : index
    %c0_68 = arith.constant 0 : index
    %106 = vector.load %arg8[%c0_67, %c0_68] : memref<10x64xf32, #tpu.memory_space<vmem>>, vector<10x64xf32>
    %107 = vector.extract_strided_slice %2 {offsets = [14, 0], sizes = [1, 64], strides = [1, 1]} : vector<48x64xf32> to vector<1x64xf32>
    %108 = vector.extract_strided_slice %1 {offsets = [0, 15], sizes = [10, 64], strides = [1, 1]} : vector<12x128xf32> to vector<10x64xf32>
    %109 = vector.broadcast %107 : vector<1x64xf32> to vector<10x64xf32>
    %110 = arith.mulf %109, %108 : vector<10x64xf32>
    %111 = arith.addf %106, %110 : vector<10x64xf32>
    %c0_69 = arith.constant 0 : index
    %c0_70 = arith.constant 0 : index
    %112 = vector.load %arg8[%c0_69, %c0_70] : memref<10x64xf32, #tpu.memory_space<vmem>>, vector<10x64xf32>
    tpu.vector_store %arg8[%c0_69, %c0_70], %111 {strides = array<i32>} : memref<10x64xf32, #tpu.memory_space<vmem>>, vector<10x64xf32>,
    %c0_71 = arith.constant 0 : index
    %c0_72 = arith.constant 0 : index
    %113 = vector.load %arg8[%c0_71, %c0_72] : memref<10x64xf32, #tpu.memory_space<vmem>>, vector<10x64xf32>
    %114 = vector.extract_strided_slice %2 {offsets = [15, 0], sizes = [1, 64], strides = [1, 1]} : vector<48x64xf32> to vector<1x64xf32>
    %115 = vector.extract_strided_slice %1 {offsets = [1, 1], sizes = [10, 64], strides = [1, 1]} : vector<12x128xf32> to vector<10x64xf32>
    %116 = vector.broadcast %114 : vector<1x64xf32> to vector<10x64xf32>
    %117 = arith.mulf %116, %115 : vector<10x64xf32>
    %118 = arith.addf %113, %117 : vector<10x64xf32>
    %c0_73 = arith.constant 0 : index
    %c0_74 = arith.constant 0 : index
    %119 = vector.load %arg8[%c0_73, %c0_74] : memref<10x64xf32, #tpu.memory_space<vmem>>, vector<10x64xf32>
    tpu.vector_store %arg8[%c0_73, %c0_74], %118 {strides = array<i32>} : memref<10x64xf32, #tpu.memory_space<vmem>>, vector<10x64xf32>,
    %c0_75 = arith.constant 0 : index
    %c0_76 = arith.constant 0 : index
    %120 = vector.load %arg8[%c0_75, %c0_76] : memref<10x64xf32, #tpu.memory_space<vmem>>, vector<10x64xf32>
    %121 = vector.extract_strided_slice %2 {offsets = [16, 0], sizes = [1, 64], strides = [1, 1]} : vector<48x64xf32> to vector<1x64xf32>
    %122 = vector.extract_strided_slice %1 {offsets = [1, 2], sizes = [10, 64], strides = [1, 1]} : vector<12x128xf32> to vector<10x64xf32>
    %123 = vector.broadcast %121 : vector<1x64xf32> to vector<10x64xf32>
    %124 = arith.mulf %123, %122 : vector<10x64xf32>
    %125 = arith.addf %120, %124 : vector<10x64xf32>
    %c0_77 = arith.constant 0 : index
    %c0_78 = arith.constant 0 : index
    %126 = vector.load %arg8[%c0_77, %c0_78] : memref<10x64xf32, #tpu.memory_space<vmem>>, vector<10x64xf32>
    tpu.vector_store %arg8[%c0_77, %c0_78], %125 {strides = array<i32>} : memref<10x64xf32, #tpu.memory_space<vmem>>, vector<10x64xf32>,
    %c0_79 = arith.constant 0 : index
    %c0_80 = arith.constant 0 : index
    %127 = vector.load %arg8[%c0_79, %c0_80] : memref<10x64xf32, #tpu.memory_space<vmem>>, vector<10x64xf32>
    %128 = vector.extract_strided_slice %2 {offsets = [17, 0], sizes = [1, 64], strides = [1, 1]} : vector<48x64xf32> to vector<1x64xf32>
    %129 = vector.extract_strided_slice %1 {offsets = [1, 3], sizes = [10, 64], strides = [1, 1]} : vector<12x128xf32> to vector<10x64xf32>
    %130 = vector.broadcast %128 : vector<1x64xf32> to vector<10x64xf32>
    %131 = arith.mulf %130, %129 : vector<10x64xf32>
    %132 = arith.addf %127, %131 : vector<10x64xf32>
    %c0_81 = arith.constant 0 : index
    %c0_82 = arith.constant 0 : index
    %133 = vector.load %arg8[%c0_81, %c0_82] : memref<10x64xf32, #tpu.memory_space<vmem>>, vector<10x64xf32>
    tpu.vector_store %arg8[%c0_81, %c0_82], %132 {strides = array<i32>} : memref<10x64xf32, #tpu.memory_space<vmem>>, vector<10x64xf32>,
    %c0_83 = arith.constant 0 : index
    %c0_84 = arith.constant 0 : index
    %134 = vector.load %arg8[%c0_83, %c0_84] : memref<10x64xf32, #tpu.memory_space<vmem>>, vector<10x64xf32>
    %135 = vector.extract_strided_slice %2 {offsets = [18, 0], sizes = [1, 64], strides = [1, 1]} : vector<48x64xf32> to vector<1x64xf32>
    %136 = vector.extract_strided_slice %1 {offsets = [1, 4], sizes = [10, 64], strides = [1, 1]} : vector<12x128xf32> to vector<10x64xf32>
    %137 = vector.broadcast %135 : vector<1x64xf32> to vector<10x64xf32>
    %138 = arith.mulf %137, %136 : vector<10x64xf32>
    %139 = arith.addf %134, %138 : vector<10x64xf32>
    %c0_85 = arith.constant 0 : index
    %c0_86 = arith.constant 0 : index
    %140 = vector.load %arg8[%c0_85, %c0_86] : memref<10x64xf32, #tpu.memory_space<vmem>>, vector<10x64xf32>
    tpu.vector_store %arg8[%c0_85, %c0_86], %139 {strides = array<i32>} : memref<10x64xf32, #tpu.memory_space<vmem>>, vector<10x64xf32>,
    %c0_87 = arith.constant 0 : index
    %c0_88 = arith.constant 0 : index
    %141 = vector.load %arg8[%c0_87, %c0_88] : memref<10x64xf32, #tpu.memory_space<vmem>>, vector<10x64xf32>
    %142 = vector.extract_strided_slice %2 {offsets = [19, 0], sizes = [1, 64], strides = [1, 1]} : vector<48x64xf32> to vector<1x64xf32>
    %143 = vector.extract_strided_slice %1 {offsets = [1, 5], sizes = [10, 64], strides = [1, 1]} : vector<12x128xf32> to vector<10x64xf32>
    %144 = vector.broadcast %142 : vector<1x64xf32> to vector<10x64xf32>
    %145 = arith.mulf %144, %143 : vector<10x64xf32>
    %146 = arith.addf %141, %145 : vector<10x64xf32>
    %c0_89 = arith.constant 0 : index
    %c0_90 = arith.constant 0 : index
    %147 = vector.load %arg8[%c0_89, %c0_90] : memref<10x64xf32, #tpu.memory_space<vmem>>, vector<10x64xf32>
    tpu.vector_store %arg8[%c0_89, %c0_90], %146 {strides = array<i32>} : memref<10x64xf32, #tpu.memory_space<vmem>>, vector<10x64xf32>,
    %c0_91 = arith.constant 0 : index
    %c0_92 = arith.constant 0 : index
    %148 = vector.load %arg8[%c0_91, %c0_92] : memref<10x64xf32, #tpu.memory_space<vmem>>, vector<10x64xf32>
    %149 = vector.extract_strided_slice %2 {offsets = [20, 0], sizes = [1, 64], strides = [1, 1]} : vector<48x64xf32> to vector<1x64xf32>
    %150 = vector.extract_strided_slice %1 {offsets = [1, 6], sizes = [10, 64], strides = [1, 1]} : vector<12x128xf32> to vector<10x64xf32>
    %151 = vector.broadcast %149 : vector<1x64xf32> to vector<10x64xf32>
    %152 = arith.mulf %151, %150 : vector<10x64xf32>
    %153 = arith.addf %148, %152 : vector<10x64xf32>
    %c0_93 = arith.constant 0 : index
    %c0_94 = arith.constant 0 : index
    %154 = vector.load %arg8[%c0_93, %c0_94] : memref<10x64xf32, #tpu.memory_space<vmem>>, vector<10x64xf32>
    tpu.vector_store %arg8[%c0_93, %c0_94], %153 {strides = array<i32>} : memref<10x64xf32, #tpu.memory_space<vmem>>, vector<10x64xf32>,
    %c0_95 = arith.constant 0 : index
    %c0_96 = arith.constant 0 : index
    %155 = vector.load %arg8[%c0_95, %c0_96] : memref<10x64xf32, #tpu.memory_space<vmem>>, vector<10x64xf32>
    %156 = vector.extract_strided_slice %2 {offsets = [21, 0], sizes = [1, 64], strides = [1, 1]} : vector<48x64xf32> to vector<1x64xf32>
    %157 = vector.extract_strided_slice %1 {offsets = [1, 7], sizes = [10, 64], strides = [1, 1]} : vector<12x128xf32> to vector<10x64xf32>
    %158 = vector.broadcast %156 : vector<1x64xf32> to vector<10x64xf32>
    %159 = arith.mulf %158, %157 : vector<10x64xf32>
    %160 = arith.addf %155, %159 : vector<10x64xf32>
    %c0_97 = arith.constant 0 : index
    %c0_98 = arith.constant 0 : index
    %161 = vector.load %arg8[%c0_97, %c0_98] : memref<10x64xf32, #tpu.memory_space<vmem>>, vector<10x64xf32>
    tpu.vector_store %arg8[%c0_97, %c0_98], %160 {strides = array<i32>} : memref<10x64xf32, #tpu.memory_space<vmem>>, vector<10x64xf32>,
    %c0_99 = arith.constant 0 : index
    %c0_100 = arith.constant 0 : index
    %162 = vector.load %arg8[%c0_99, %c0_100] : memref<10x64xf32, #tpu.memory_space<vmem>>, vector<10x64xf32>
    %163 = vector.extract_strided_slice %2 {offsets = [22, 0], sizes = [1, 64], strides = [1, 1]} : vector<48x64xf32> to vector<1x64xf32>
    %164 = vector.extract_strided_slice %1 {offsets = [1, 8], sizes = [10, 64], strides = [1, 1]} : vector<12x128xf32> to vector<10x64xf32>
    %165 = vector.broadcast %163 : vector<1x64xf32> to vector<10x64xf32>
    %166 = arith.mulf %165, %164 : vector<10x64xf32>
    %167 = arith.addf %162, %166 : vector<10x64xf32>
    %c0_101 = arith.constant 0 : index
    %c0_102 = arith.constant 0 : index
    %168 = vector.load %arg8[%c0_101, %c0_102] : memref<10x64xf32, #tpu.memory_space<vmem>>, vector<10x64xf32>
    tpu.vector_store %arg8[%c0_101, %c0_102], %167 {strides = array<i32>} : memref<10x64xf32, #tpu.memory_space<vmem>>, vector<10x64xf32>,
    %c0_103 = arith.constant 0 : index
    %c0_104 = arith.constant 0 : index
    %169 = vector.load %arg8[%c0_103, %c0_104] : memref<10x64xf32, #tpu.memory_space<vmem>>, vector<10x64xf32>
    %170 = vector.extract_strided_slice %2 {offsets = [23, 0], sizes = [1, 64], strides = [1, 1]} : vector<48x64xf32> to vector<1x64xf32>
    %171 = vector.extract_strided_slice %1 {offsets = [1, 9], sizes = [10, 64], strides = [1, 1]} : vector<12x128xf32> to vector<10x64xf32>
    %172 = vector.broadcast %170 : vector<1x64xf32> to vector<10x64xf32>
    %173 = arith.mulf %172, %171 : vector<10x64xf32>
    %174 = arith.addf %169, %173 : vector<10x64xf32>
    %c0_105 = arith.constant 0 : index
    %c0_106 = arith.constant 0 : index
    %175 = vector.load %arg8[%c0_105, %c0_106] : memref<10x64xf32, #tpu.memory_space<vmem>>, vector<10x64xf32>
    tpu.vector_store %arg8[%c0_105, %c0_106], %174 {strides = array<i32>} : memref<10x64xf32, #tpu.memory_space<vmem>>, vector<10x64xf32>,
    %c0_107 = arith.constant 0 : index
    %c0_108 = arith.constant 0 : index
    %176 = vector.load %arg8[%c0_107, %c0_108] : memref<10x64xf32, #tpu.memory_space<vmem>>, vector<10x64xf32>
    %177 = vector.extract_strided_slice %2 {offsets = [24, 0], sizes = [1, 64], strides = [1, 1]} : vector<48x64xf32> to vector<1x64xf32>
    %178 = vector.extract_strided_slice %1 {offsets = [1, 10], sizes = [10, 64], strides = [1, 1]} : vector<12x128xf32> to vector<10x64xf32>
    %179 = vector.broadcast %177 : vector<1x64xf32> to vector<10x64xf32>
    %180 = arith.mulf %179, %178 : vector<10x64xf32>
    %181 = arith.addf %176, %180 : vector<10x64xf32>
    %c0_109 = arith.constant 0 : index
    %c0_110 = arith.constant 0 : index
    %182 = vector.load %arg8[%c0_109, %c0_110] : memref<10x64xf32, #tpu.memory_space<vmem>>, vector<10x64xf32>
    tpu.vector_store %arg8[%c0_109, %c0_110], %181 {strides = array<i32>} : memref<10x64xf32, #tpu.memory_space<vmem>>, vector<10x64xf32>,
    %c0_111 = arith.constant 0 : index
    %c0_112 = arith.constant 0 : index
    %183 = vector.load %arg8[%c0_111, %c0_112] : memref<10x64xf32, #tpu.memory_space<vmem>>, vector<10x64xf32>
    %184 = vector.extract_strided_slice %2 {offsets = [25, 0], sizes = [1, 64], strides = [1, 1]} : vector<48x64xf32> to vector<1x64xf32>
    %185 = vector.extract_strided_slice %1 {offsets = [1, 11], sizes = [10, 64], strides = [1, 1]} : vector<12x128xf32> to vector<10x64xf32>
    %186 = vector.broadcast %184 : vector<1x64xf32> to vector<10x64xf32>
    %187 = arith.mulf %186, %185 : vector<10x64xf32>
    %188 = arith.addf %183, %187 : vector<10x64xf32>
    %c0_113 = arith.constant 0 : index
    %c0_114 = arith.constant 0 : index
    %189 = vector.load %arg8[%c0_113, %c0_114] : memref<10x64xf32, #tpu.memory_space<vmem>>, vector<10x64xf32>
    tpu.vector_store %arg8[%c0_113, %c0_114], %188 {strides = array<i32>} : memref<10x64xf32, #tpu.memory_space<vmem>>, vector<10x64xf32>,
    %c0_115 = arith.constant 0 : index
    %c0_116 = arith.constant 0 : index
    %190 = vector.load %arg8[%c0_115, %c0_116] : memref<10x64xf32, #tpu.memory_space<vmem>>, vector<10x64xf32>
    %191 = vector.extract_strided_slice %2 {offsets = [26, 0], sizes = [1, 64], strides = [1, 1]} : vector<48x64xf32> to vector<1x64xf32>
    %192 = vector.extract_strided_slice %1 {offsets = [1, 12], sizes = [10, 64], strides = [1, 1]} : vector<12x128xf32> to vector<10x64xf32>
    %193 = vector.broadcast %191 : vector<1x64xf32> to vector<10x64xf32>
    %194 = arith.mulf %193, %192 : vector<10x64xf32>
    %195 = arith.addf %190, %194 : vector<10x64xf32>
    %c0_117 = arith.constant 0 : index
    %c0_118 = arith.constant 0 : index
    %196 = vector.load %arg8[%c0_117, %c0_118] : memref<10x64xf32, #tpu.memory_space<vmem>>, vector<10x64xf32>
    tpu.vector_store %arg8[%c0_117, %c0_118], %195 {strides = array<i32>} : memref<10x64xf32, #tpu.memory_space<vmem>>, vector<10x64xf32>,
    %c0_119 = arith.constant 0 : index
    %c0_120 = arith.constant 0 : index
    %197 = vector.load %arg8[%c0_119, %c0_120] : memref<10x64xf32, #tpu.memory_space<vmem>>, vector<10x64xf32>
    %198 = vector.extract_strided_slice %2 {offsets = [27, 0], sizes = [1, 64], strides = [1, 1]} : vector<48x64xf32> to vector<1x64xf32>
    %199 = vector.extract_strided_slice %1 {offsets = [1, 13], sizes = [10, 64], strides = [1, 1]} : vector<12x128xf32> to vector<10x64xf32>
    %200 = vector.broadcast %198 : vector<1x64xf32> to vector<10x64xf32>
    %201 = arith.mulf %200, %199 : vector<10x64xf32>
    %202 = arith.addf %197, %201 : vector<10x64xf32>
    %c0_121 = arith.constant 0 : index
    %c0_122 = arith.constant 0 : index
    %203 = vector.load %arg8[%c0_121, %c0_122] : memref<10x64xf32, #tpu.memory_space<vmem>>, vector<10x64xf32>
    tpu.vector_store %arg8[%c0_121, %c0_122], %202 {strides = array<i32>} : memref<10x64xf32, #tpu.memory_space<vmem>>, vector<10x64xf32>,
    %c0_123 = arith.constant 0 : index
    %c0_124 = arith.constant 0 : index
    %204 = vector.load %arg8[%c0_123, %c0_124] : memref<10x64xf32, #tpu.memory_space<vmem>>, vector<10x64xf32>
    %205 = vector.extract_strided_slice %2 {offsets = [28, 0], sizes = [1, 64], strides = [1, 1]} : vector<48x64xf32> to vector<1x64xf32>
    %206 = vector.extract_strided_slice %1 {offsets = [1, 14], sizes = [10, 64], strides = [1, 1]} : vector<12x128xf32> to vector<10x64xf32>
    %207 = vector.broadcast %205 : vector<1x64xf32> to vector<10x64xf32>
    %208 = arith.mulf %207, %206 : vector<10x64xf32>
    %209 = arith.addf %204, %208 : vector<10x64xf32>
    %c0_125 = arith.constant 0 : index
    %c0_126 = arith.constant 0 : index
    %210 = vector.load %arg8[%c0_125, %c0_126] : memref<10x64xf32, #tpu.memory_space<vmem>>, vector<10x64xf32>
    tpu.vector_store %arg8[%c0_125, %c0_126], %209 {strides = array<i32>} : memref<10x64xf32, #tpu.memory_space<vmem>>, vector<10x64xf32>,
    %c0_127 = arith.constant 0 : index
    %c0_128 = arith.constant 0 : index
    %211 = vector.load %arg8[%c0_127, %c0_128] : memref<10x64xf32, #tpu.memory_space<vmem>>, vector<10x64xf32>
    %212 = vector.extract_strided_slice %2 {offsets = [29, 0], sizes = [1, 64], strides = [1, 1]} : vector<48x64xf32> to vector<1x64xf32>
    %213 = vector.extract_strided_slice %1 {offsets = [1, 15], sizes = [10, 64], strides = [1, 1]} : vector<12x128xf32> to vector<10x64xf32>
    %214 = vector.broadcast %212 : vector<1x64xf32> to vector<10x64xf32>
    %215 = arith.mulf %214, %213 : vector<10x64xf32>
    %216 = arith.addf %211, %215 : vector<10x64xf32>
    %c0_129 = arith.constant 0 : index
    %c0_130 = arith.constant 0 : index
    %217 = vector.load %arg8[%c0_129, %c0_130] : memref<10x64xf32, #tpu.memory_space<vmem>>, vector<10x64xf32>
    tpu.vector_store %arg8[%c0_129, %c0_130], %216 {strides = array<i32>} : memref<10x64xf32, #tpu.memory_space<vmem>>, vector<10x64xf32>,
    %c0_131 = arith.constant 0 : index
    %c0_132 = arith.constant 0 : index
    %218 = vector.load %arg8[%c0_131, %c0_132] : memref<10x64xf32, #tpu.memory_space<vmem>>, vector<10x64xf32>
    %219 = vector.extract_strided_slice %2 {offsets = [30, 0], sizes = [1, 64], strides = [1, 1]} : vector<48x64xf32> to vector<1x64xf32>
    %220 = vector.extract_strided_slice %1 {offsets = [2, 1], sizes = [10, 64], strides = [1, 1]} : vector<12x128xf32> to vector<10x64xf32>
    %221 = vector.broadcast %219 : vector<1x64xf32> to vector<10x64xf32>
    %222 = arith.mulf %221, %220 : vector<10x64xf32>
    %223 = arith.addf %218, %222 : vector<10x64xf32>
    %c0_133 = arith.constant 0 : index
    %c0_134 = arith.constant 0 : index
    %224 = vector.load %arg8[%c0_133, %c0_134] : memref<10x64xf32, #tpu.memory_space<vmem>>, vector<10x64xf32>
    tpu.vector_store %arg8[%c0_133, %c0_134], %223 {strides = array<i32>} : memref<10x64xf32, #tpu.memory_space<vmem>>, vector<10x64xf32>,
    %c0_135 = arith.constant 0 : index
    %c0_136 = arith.constant 0 : index
    %225 = vector.load %arg8[%c0_135, %c0_136] : memref<10x64xf32, #tpu.memory_space<vmem>>, vector<10x64xf32>
    %226 = vector.extract_strided_slice %2 {offsets = [31, 0], sizes = [1, 64], strides = [1, 1]} : vector<48x64xf32> to vector<1x64xf32>
    %227 = vector.extract_strided_slice %1 {offsets = [2, 2], sizes = [10, 64], strides = [1, 1]} : vector<12x128xf32> to vector<10x64xf32>
    %228 = vector.broadcast %226 : vector<1x64xf32> to vector<10x64xf32>
    %229 = arith.mulf %228, %227 : vector<10x64xf32>
    %230 = arith.addf %225, %229 : vector<10x64xf32>
    %c0_137 = arith.constant 0 : index
    %c0_138 = arith.constant 0 : index
    %231 = vector.load %arg8[%c0_137, %c0_138] : memref<10x64xf32, #tpu.memory_space<vmem>>, vector<10x64xf32>
    tpu.vector_store %arg8[%c0_137, %c0_138], %230 {strides = array<i32>} : memref<10x64xf32, #tpu.memory_space<vmem>>, vector<10x64xf32>,
    %c0_139 = arith.constant 0 : index
    %c0_140 = arith.constant 0 : index
    %232 = vector.load %arg8[%c0_139, %c0_140] : memref<10x64xf32, #tpu.memory_space<vmem>>, vector<10x64xf32>
    %233 = vector.extract_strided_slice %2 {offsets = [32, 0], sizes = [1, 64], strides = [1, 1]} : vector<48x64xf32> to vector<1x64xf32>
    %234 = vector.extract_strided_slice %1 {offsets = [2, 3], sizes = [10, 64], strides = [1, 1]} : vector<12x128xf32> to vector<10x64xf32>
    %235 = vector.broadcast %233 : vector<1x64xf32> to vector<10x64xf32>
    %236 = arith.mulf %235, %234 : vector<10x64xf32>
    %237 = arith.addf %232, %236 : vector<10x64xf32>
    %c0_141 = arith.constant 0 : index
    %c0_142 = arith.constant 0 : index
    %238 = vector.load %arg8[%c0_141, %c0_142] : memref<10x64xf32, #tpu.memory_space<vmem>>, vector<10x64xf32>
    tpu.vector_store %arg8[%c0_141, %c0_142], %237 {strides = array<i32>} : memref<10x64xf32, #tpu.memory_space<vmem>>, vector<10x64xf32>,
    %c0_143 = arith.constant 0 : index
    %c0_144 = arith.constant 0 : index
    %239 = vector.load %arg8[%c0_143, %c0_144] : memref<10x64xf32, #tpu.memory_space<vmem>>, vector<10x64xf32>
    %240 = vector.extract_strided_slice %2 {offsets = [33, 0], sizes = [1, 64], strides = [1, 1]} : vector<48x64xf32> to vector<1x64xf32>
    %241 = vector.extract_strided_slice %1 {offsets = [2, 4], sizes = [10, 64], strides = [1, 1]} : vector<12x128xf32> to vector<10x64xf32>
    %242 = vector.broadcast %240 : vector<1x64xf32> to vector<10x64xf32>
    %243 = arith.mulf %242, %241 : vector<10x64xf32>
    %244 = arith.addf %239, %243 : vector<10x64xf32>
    %c0_145 = arith.constant 0 : index
    %c0_146 = arith.constant 0 : index
    %245 = vector.load %arg8[%c0_145, %c0_146] : memref<10x64xf32, #tpu.memory_space<vmem>>, vector<10x64xf32>
    tpu.vector_store %arg8[%c0_145, %c0_146], %244 {strides = array<i32>} : memref<10x64xf32, #tpu.memory_space<vmem>>, vector<10x64xf32>,
    %c0_147 = arith.constant 0 : index
    %c0_148 = arith.constant 0 : index
    %246 = vector.load %arg8[%c0_147, %c0_148] : memref<10x64xf32, #tpu.memory_space<vmem>>, vector<10x64xf32>
    %247 = vector.extract_strided_slice %2 {offsets = [34, 0], sizes = [1, 64], strides = [1, 1]} : vector<48x64xf32> to vector<1x64xf32>
    %248 = vector.extract_strided_slice %1 {offsets = [2, 5], sizes = [10, 64], strides = [1, 1]} : vector<12x128xf32> to vector<10x64xf32>
    %249 = vector.broadcast %247 : vector<1x64xf32> to vector<10x64xf32>
    %250 = arith.mulf %249, %248 : vector<10x64xf32>
    %251 = arith.addf %246, %250 : vector<10x64xf32>
    %c0_149 = arith.constant 0 : index
    %c0_150 = arith.constant 0 : index
    %252 = vector.load %arg8[%c0_149, %c0_150] : memref<10x64xf32, #tpu.memory_space<vmem>>, vector<10x64xf32>
    tpu.vector_store %arg8[%c0_149, %c0_150], %251 {strides = array<i32>} : memref<10x64xf32, #tpu.memory_space<vmem>>, vector<10x64xf32>,
    %c0_151 = arith.constant 0 : index
    %c0_152 = arith.constant 0 : index
    %253 = vector.load %arg8[%c0_151, %c0_152] : memref<10x64xf32, #tpu.memory_space<vmem>>, vector<10x64xf32>
    %254 = vector.extract_strided_slice %2 {offsets = [35, 0], sizes = [1, 64], strides = [1, 1]} : vector<48x64xf32> to vector<1x64xf32>
    %255 = vector.extract_strided_slice %1 {offsets = [2, 6], sizes = [10, 64], strides = [1, 1]} : vector<12x128xf32> to vector<10x64xf32>
    %256 = vector.broadcast %254 : vector<1x64xf32> to vector<10x64xf32>
    %257 = arith.mulf %256, %255 : vector<10x64xf32>
    %258 = arith.addf %253, %257 : vector<10x64xf32>
    %c0_153 = arith.constant 0 : index
    %c0_154 = arith.constant 0 : index
    %259 = vector.load %arg8[%c0_153, %c0_154] : memref<10x64xf32, #tpu.memory_space<vmem>>, vector<10x64xf32>
    tpu.vector_store %arg8[%c0_153, %c0_154], %258 {strides = array<i32>} : memref<10x64xf32, #tpu.memory_space<vmem>>, vector<10x64xf32>,
    %c0_155 = arith.constant 0 : index
    %c0_156 = arith.constant 0 : index
    %260 = vector.load %arg8[%c0_155, %c0_156] : memref<10x64xf32, #tpu.memory_space<vmem>>, vector<10x64xf32>
    %261 = vector.extract_strided_slice %2 {offsets = [36, 0], sizes = [1, 64], strides = [1, 1]} : vector<48x64xf32> to vector<1x64xf32>
    %262 = vector.extract_strided_slice %1 {offsets = [2, 7], sizes = [10, 64], strides = [1, 1]} : vector<12x128xf32> to vector<10x64xf32>
    %263 = vector.broadcast %261 : vector<1x64xf32> to vector<10x64xf32>
    %264 = arith.mulf %263, %262 : vector<10x64xf32>
    %265 = arith.addf %260, %264 : vector<10x64xf32>
    %c0_157 = arith.constant 0 : index
    %c0_158 = arith.constant 0 : index
    %266 = vector.load %arg8[%c0_157, %c0_158] : memref<10x64xf32, #tpu.memory_space<vmem>>, vector<10x64xf32>
    tpu.vector_store %arg8[%c0_157, %c0_158], %265 {strides = array<i32>} : memref<10x64xf32, #tpu.memory_space<vmem>>, vector<10x64xf32>,
    %c0_159 = arith.constant 0 : index
    %c0_160 = arith.constant 0 : index
    %267 = vector.load %arg8[%c0_159, %c0_160] : memref<10x64xf32, #tpu.memory_space<vmem>>, vector<10x64xf32>
    %268 = vector.extract_strided_slice %2 {offsets = [37, 0], sizes = [1, 64], strides = [1, 1]} : vector<48x64xf32> to vector<1x64xf32>
    %269 = vector.extract_strided_slice %1 {offsets = [2, 8], sizes = [10, 64], strides = [1, 1]} : vector<12x128xf32> to vector<10x64xf32>
    %270 = vector.broadcast %268 : vector<1x64xf32> to vector<10x64xf32>
    %271 = arith.mulf %270, %269 : vector<10x64xf32>
    %272 = arith.addf %267, %271 : vector<10x64xf32>
    %c0_161 = arith.constant 0 : index
    %c0_162 = arith.constant 0 : index
    %273 = vector.load %arg8[%c0_161, %c0_162] : memref<10x64xf32, #tpu.memory_space<vmem>>, vector<10x64xf32>
    tpu.vector_store %arg8[%c0_161, %c0_162], %272 {strides = array<i32>} : memref<10x64xf32, #tpu.memory_space<vmem>>, vector<10x64xf32>,
    %c0_163 = arith.constant 0 : index
    %c0_164 = arith.constant 0 : index
    %274 = vector.load %arg8[%c0_163, %c0_164] : memref<10x64xf32, #tpu.memory_space<vmem>>, vector<10x64xf32>
    %275 = vector.extract_strided_slice %2 {offsets = [38, 0], sizes = [1, 64], strides = [1, 1]} : vector<48x64xf32> to vector<1x64xf32>
    %276 = vector.extract_strided_slice %1 {offsets = [2, 9], sizes = [10, 64], strides = [1, 1]} : vector<12x128xf32> to vector<10x64xf32>
    %277 = vector.broadcast %275 : vector<1x64xf32> to vector<10x64xf32>
    %278 = arith.mulf %277, %276 : vector<10x64xf32>
    %279 = arith.addf %274, %278 : vector<10x64xf32>
    %c0_165 = arith.constant 0 : index
    %c0_166 = arith.constant 0 : index
    %280 = vector.load %arg8[%c0_165, %c0_166] : memref<10x64xf32, #tpu.memory_space<vmem>>, vector<10x64xf32>
    tpu.vector_store %arg8[%c0_165, %c0_166], %279 {strides = array<i32>} : memref<10x64xf32, #tpu.memory_space<vmem>>, vector<10x64xf32>,
    %c0_167 = arith.constant 0 : index
    %c0_168 = arith.constant 0 : index
    %281 = vector.load %arg8[%c0_167, %c0_168] : memref<10x64xf32, #tpu.memory_space<vmem>>, vector<10x64xf32>
    %282 = vector.extract_strided_slice %2 {offsets = [39, 0], sizes = [1, 64], strides = [1, 1]} : vector<48x64xf32> to vector<1x64xf32>
    %283 = vector.extract_strided_slice %1 {offsets = [2, 10], sizes = [10, 64], strides = [1, 1]} : vector<12x128xf32> to vector<10x64xf32>
    %284 = vector.broadcast %282 : vector<1x64xf32> to vector<10x64xf32>
    %285 = arith.mulf %284, %283 : vector<10x64xf32>
    %286 = arith.addf %281, %285 : vector<10x64xf32>
    %c0_169 = arith.constant 0 : index
    %c0_170 = arith.constant 0 : index
    %287 = vector.load %arg8[%c0_169, %c0_170] : memref<10x64xf32, #tpu.memory_space<vmem>>, vector<10x64xf32>
    tpu.vector_store %arg8[%c0_169, %c0_170], %286 {strides = array<i32>} : memref<10x64xf32, #tpu.memory_space<vmem>>, vector<10x64xf32>,
    %c0_171 = arith.constant 0 : index
    %c0_172 = arith.constant 0 : index
    %288 = vector.load %arg8[%c0_171, %c0_172] : memref<10x64xf32, #tpu.memory_space<vmem>>, vector<10x64xf32>
    %289 = vector.extract_strided_slice %2 {offsets = [40, 0], sizes = [1, 64], strides = [1, 1]} : vector<48x64xf32> to vector<1x64xf32>
    %290 = vector.extract_strided_slice %1 {offsets = [2, 11], sizes = [10, 64], strides = [1, 1]} : vector<12x128xf32> to vector<10x64xf32>
    %291 = vector.broadcast %289 : vector<1x64xf32> to vector<10x64xf32>
    %292 = arith.mulf %291, %290 : vector<10x64xf32>
    %293 = arith.addf %288, %292 : vector<10x64xf32>
    %c0_173 = arith.constant 0 : index
    %c0_174 = arith.constant 0 : index
    %294 = vector.load %arg8[%c0_173, %c0_174] : memref<10x64xf32, #tpu.memory_space<vmem>>, vector<10x64xf32>
    tpu.vector_store %arg8[%c0_173, %c0_174], %293 {strides = array<i32>} : memref<10x64xf32, #tpu.memory_space<vmem>>, vector<10x64xf32>,
    %c0_175 = arith.constant 0 : index
    %c0_176 = arith.constant 0 : index
    %295 = vector.load %arg8[%c0_175, %c0_176] : memref<10x64xf32, #tpu.memory_space<vmem>>, vector<10x64xf32>
    %296 = vector.extract_strided_slice %2 {offsets = [41, 0], sizes = [1, 64], strides = [1, 1]} : vector<48x64xf32> to vector<1x64xf32>
    %297 = vector.extract_strided_slice %1 {offsets = [2, 12], sizes = [10, 64], strides = [1, 1]} : vector<12x128xf32> to vector<10x64xf32>
    %298 = vector.broadcast %296 : vector<1x64xf32> to vector<10x64xf32>
    %299 = arith.mulf %298, %297 : vector<10x64xf32>
    %300 = arith.addf %295, %299 : vector<10x64xf32>
    %c0_177 = arith.constant 0 : index
    %c0_178 = arith.constant 0 : index
    %301 = vector.load %arg8[%c0_177, %c0_178] : memref<10x64xf32, #tpu.memory_space<vmem>>, vector<10x64xf32>
    tpu.vector_store %arg8[%c0_177, %c0_178], %300 {strides = array<i32>} : memref<10x64xf32, #tpu.memory_space<vmem>>, vector<10x64xf32>,
    %c0_179 = arith.constant 0 : index
    %c0_180 = arith.constant 0 : index
    %302 = vector.load %arg8[%c0_179, %c0_180] : memref<10x64xf32, #tpu.memory_space<vmem>>, vector<10x64xf32>
    %303 = vector.extract_strided_slice %2 {offsets = [42, 0], sizes = [1, 64], strides = [1, 1]} : vector<48x64xf32> to vector<1x64xf32>
    %304 = vector.extract_strided_slice %1 {offsets = [2, 13], sizes = [10, 64], strides = [1, 1]} : vector<12x128xf32> to vector<10x64xf32>
    %305 = vector.broadcast %303 : vector<1x64xf32> to vector<10x64xf32>
    %306 = arith.mulf %305, %304 : vector<10x64xf32>
    %307 = arith.addf %302, %306 : vector<10x64xf32>
    %c0_181 = arith.constant 0 : index
    %c0_182 = arith.constant 0 : index
    %308 = vector.load %arg8[%c0_181, %c0_182] : memref<10x64xf32, #tpu.memory_space<vmem>>, vector<10x64xf32>
    tpu.vector_store %arg8[%c0_181, %c0_182], %307 {strides = array<i32>} : memref<10x64xf32, #tpu.memory_space<vmem>>, vector<10x64xf32>,
    %c0_183 = arith.constant 0 : index
    %c0_184 = arith.constant 0 : index
    %309 = vector.load %arg8[%c0_183, %c0_184] : memref<10x64xf32, #tpu.memory_space<vmem>>, vector<10x64xf32>
    %310 = vector.extract_strided_slice %2 {offsets = [43, 0], sizes = [1, 64], strides = [1, 1]} : vector<48x64xf32> to vector<1x64xf32>
    %311 = vector.extract_strided_slice %1 {offsets = [2, 14], sizes = [10, 64], strides = [1, 1]} : vector<12x128xf32> to vector<10x64xf32>
    %312 = vector.broadcast %310 : vector<1x64xf32> to vector<10x64xf32>
    %313 = arith.mulf %312, %311 : vector<10x64xf32>
    %314 = arith.addf %309, %313 : vector<10x64xf32>
    %c0_185 = arith.constant 0 : index
    %c0_186 = arith.constant 0 : index
    %315 = vector.load %arg8[%c0_185, %c0_186] : memref<10x64xf32, #tpu.memory_space<vmem>>, vector<10x64xf32>
    tpu.vector_store %arg8[%c0_185, %c0_186], %314 {strides = array<i32>} : memref<10x64xf32, #tpu.memory_space<vmem>>, vector<10x64xf32>,
    %c0_187 = arith.constant 0 : index
    %c0_188 = arith.constant 0 : index
    %316 = vector.load %arg8[%c0_187, %c0_188] : memref<10x64xf32, #tpu.memory_space<vmem>>, vector<10x64xf32>
    %317 = vector.extract_strided_slice %2 {offsets = [44, 0], sizes = [1, 64], strides = [1, 1]} : vector<48x64xf32> to vector<1x64xf32>
    %318 = vector.extract_strided_slice %1 {offsets = [2, 15], sizes = [10, 64], strides = [1, 1]} : vector<12x128xf32> to vector<10x64xf32>
    %319 = vector.broadcast %317 : vector<1x64xf32> to vector<10x64xf32>
    %320 = arith.mulf %319, %318 : vector<10x64xf32>
    %321 = arith.addf %316, %320 : vector<10x64xf32>
    %c0_189 = arith.constant 0 : index
    %c0_190 = arith.constant 0 : index
    %322 = vector.load %arg8[%c0_189, %c0_190] : memref<10x64xf32, #tpu.memory_space<vmem>>, vector<10x64xf32>
    tpu.vector_store %arg8[%c0_189, %c0_190], %321 {strides = array<i32>} : memref<10x64xf32, #tpu.memory_space<vmem>>, vector<10x64xf32>,
    %cst = arith.constant 0.000000e+00 : f32
    %323 = vector.broadcast %cst : f32 to vector<10x128xf32>
    %c0_191 = arith.constant 0 : index
    %c0_192 = arith.constant 0 : index
    %324 = vector.load %arg9[%c0_191, %c0_192] : memref<10x128xf32, #tpu.memory_space<vmem>>, vector<10x128xf32>
    tpu.vector_store %arg9[%c0_191, %c0_192], %323 {strides = array<i32>} : memref<10x128xf32, #tpu.memory_space<vmem>>, vector<10x128xf32>,
    %c0_193 = arith.constant 0 : index
    %c0_194 = arith.constant 0 : index
    %325 = vector.load %arg8[%c0_193, %c0_194] : memref<10x64xf32, #tpu.memory_space<vmem>>, vector<10x64xf32>
    %cst_195 = arith.constant 0.000000e+00 : f32
    %326 = vector.broadcast %cst_195 : f32 to vector<10x64xf32>
    %327 = arith.maximumf %325, %326 : vector<10x64xf32>
    %c0_196 = arith.constant 0 : index
    %c8 = arith.constant 8 : index
    %328 = vector.load %arg9[%c0_196, %c8] : memref<10x128xf32, #tpu.memory_space<vmem>>, vector<10x64xf32>
    tpu.vector_store %arg9[%c0_196, %c8], %327 {strides = array<i32>} : memref<10x128xf32, #tpu.memory_space<vmem>>, vector<10x64xf32>,
    %c0_i32 = arith.constant 0 : i32
    %329 = arith.cmpi eq, %arg1, %c0_i32 : i32
    %330 = arith.extui %329 : i1 to i32
    %c0_i32_197 = arith.constant 0 : i32
    %331 = arith.cmpi ne, %330, %c0_i32_197 : i32
    scf.if %331 {
      %cst_567 = arith.constant 0.000000e+00 : f32
      %794 = vector.broadcast %cst_567 : f32 to vector<1x128xf32>
      %c0_568 = arith.constant 0 : index
      %c0_569 = arith.constant 0 : index
      %795 = vector.load %arg9[%c0_568, %c0_569] : memref<10x128xf32, #tpu.memory_space<vmem>>, vector<1x128xf32>
      tpu.vector_store %arg9[%c0_568, %c0_569], %794 {strides = array<i32>} : memref<10x128xf32, #tpu.memory_space<vmem>>, vector<1x128xf32>,
    } else {
    }
    %c1_i32 = arith.constant 1 : i32
    %332 = arith.cmpi eq, %arg1, %c1_i32 : i32
    %333 = arith.extui %332 : i1 to i32
    %c0_i32_198 = arith.constant 0 : i32
    %334 = arith.cmpi ne, %333, %c0_i32_198 : i32
    scf.if %334 {
      %cst_567 = arith.constant 0.000000e+00 : f32
      %794 = vector.broadcast %cst_567 : f32 to vector<1x128xf32>
      %c9 = arith.constant 9 : index
      %c0_568 = arith.constant 0 : index
      %795 = vector.load %arg9[%c9, %c0_568] : memref<10x128xf32, #tpu.memory_space<vmem>>, vector<1x128xf32>
      tpu.vector_store %arg9[%c9, %c0_568], %794 {strides = array<i32>} : memref<10x128xf32, #tpu.memory_space<vmem>>, vector<1x128xf32>,
    } else {
    }
    %c0_199 = arith.constant 0 : index
    %c0_200 = arith.constant 0 : index
    %335 = vector.load %arg9[%c0_199, %c0_200] : memref<10x128xf32, #tpu.memory_space<vmem>>, vector<10x128xf32>
    %c0_201 = arith.constant 0 : index
    %c0_202 = arith.constant 0 : index
    %336 = vector.load %arg6[%c0_201, %c0_202] : memref<1x64xf32, #tpu.memory_space<vmem>>, vector<1x64xf32>
    %337 = vector.shape_cast %336 : vector<1x64xf32> to vector<1x64xf32>
    %338 = vector.broadcast %337 : vector<1x64xf32> to vector<8x64xf32>
    %339 = vector.extract_strided_slice %1 {offsets = [2, 8], sizes = [8, 64], strides = [1, 1]} : vector<12x128xf32> to vector<8x64xf32>
    %340 = arith.addf %338, %339 : vector<8x64xf32>
    %c0_203 = arith.constant 0 : index
    %c0_204 = arith.constant 0 : index
    %c0_205 = arith.constant 0 : index
    %c0_206 = arith.constant 0 : index
    %341 = vector.load %arg7[%c0_203, %c0_204, %c0_205, %c0_206] : memref<1x1x8x64xf32, #tpu.memory_space<vmem>>, vector<1x1x8x64xf32>
    %342 = vector.shape_cast %341 : vector<1x1x8x64xf32> to vector<8x64xf32>
    %343 = vector.shape_cast %340 : vector<8x64xf32> to vector<1x1x8x64xf32>
    tpu.vector_store %arg7[%c0_203, %c0_204, %c0_205, %c0_206], %343 {strides = array<i32>} : memref<1x1x8x64xf32, #tpu.memory_space<vmem>>, vector<1x1x8x64xf32>,
    %c0_207 = arith.constant 0 : index
    %c0_208 = arith.constant 0 : index
    %c0_209 = arith.constant 0 : index
    %c0_210 = arith.constant 0 : index
    %344 = vector.load %arg7[%c0_207, %c0_208, %c0_209, %c0_210] : memref<1x1x8x64xf32, #tpu.memory_space<vmem>>, vector<1x1x8x64xf32>
    %345 = vector.shape_cast %344 : vector<1x1x8x64xf32> to vector<8x64xf32>
    %346 = vector.extract_strided_slice %3 {offsets = [0, 0], sizes = [1, 64], strides = [1, 1]} : vector<48x64xf32> to vector<1x64xf32>
    %347 = vector.extract_strided_slice %335 {offsets = [0, 1], sizes = [8, 64], strides = [1, 1]} : vector<10x128xf32> to vector<8x64xf32>
    %348 = vector.broadcast %346 : vector<1x64xf32> to vector<8x64xf32>
    %349 = arith.mulf %348, %347 : vector<8x64xf32>
    %350 = arith.addf %345, %349 : vector<8x64xf32>
    %c0_211 = arith.constant 0 : index
    %c0_212 = arith.constant 0 : index
    %c0_213 = arith.constant 0 : index
    %c0_214 = arith.constant 0 : index
    %351 = vector.load %arg7[%c0_211, %c0_212, %c0_213, %c0_214] : memref<1x1x8x64xf32, #tpu.memory_space<vmem>>, vector<1x1x8x64xf32>
    %352 = vector.shape_cast %351 : vector<1x1x8x64xf32> to vector<8x64xf32>
    %353 = vector.shape_cast %350 : vector<8x64xf32> to vector<1x1x8x64xf32>
    tpu.vector_store %arg7[%c0_211, %c0_212, %c0_213, %c0_214], %353 {strides = array<i32>} : memref<1x1x8x64xf32, #tpu.memory_space<vmem>>, vector<1x1x8x64xf32>,
    %c0_215 = arith.constant 0 : index
    %c0_216 = arith.constant 0 : index
    %c0_217 = arith.constant 0 : index
    %c0_218 = arith.constant 0 : index
    %354 = vector.load %arg7[%c0_215, %c0_216, %c0_217, %c0_218] : memref<1x1x8x64xf32, #tpu.memory_space<vmem>>, vector<1x1x8x64xf32>
    %355 = vector.shape_cast %354 : vector<1x1x8x64xf32> to vector<8x64xf32>
    %356 = vector.extract_strided_slice %3 {offsets = [1, 0], sizes = [1, 64], strides = [1, 1]} : vector<48x64xf32> to vector<1x64xf32>
    %357 = vector.extract_strided_slice %335 {offsets = [0, 2], sizes = [8, 64], strides = [1, 1]} : vector<10x128xf32> to vector<8x64xf32>
    %358 = vector.broadcast %356 : vector<1x64xf32> to vector<8x64xf32>
    %359 = arith.mulf %358, %357 : vector<8x64xf32>
    %360 = arith.addf %355, %359 : vector<8x64xf32>
    %c0_219 = arith.constant 0 : index
    %c0_220 = arith.constant 0 : index
    %c0_221 = arith.constant 0 : index
    %c0_222 = arith.constant 0 : index
    %361 = vector.load %arg7[%c0_219, %c0_220, %c0_221, %c0_222] : memref<1x1x8x64xf32, #tpu.memory_space<vmem>>, vector<1x1x8x64xf32>
    %362 = vector.shape_cast %361 : vector<1x1x8x64xf32> to vector<8x64xf32>
    %363 = vector.shape_cast %360 : vector<8x64xf32> to vector<1x1x8x64xf32>
    tpu.vector_store %arg7[%c0_219, %c0_220, %c0_221, %c0_222], %363 {strides = array<i32>} : memref<1x1x8x64xf32, #tpu.memory_space<vmem>>, vector<1x1x8x64xf32>,
    %c0_223 = arith.constant 0 : index
    %c0_224 = arith.constant 0 : index
    %c0_225 = arith.constant 0 : index
    %c0_226 = arith.constant 0 : index
    %364 = vector.load %arg7[%c0_223, %c0_224, %c0_225, %c0_226] : memref<1x1x8x64xf32, #tpu.memory_space<vmem>>, vector<1x1x8x64xf32>
    %365 = vector.shape_cast %364 : vector<1x1x8x64xf32> to vector<8x64xf32>
    %366 = vector.extract_strided_slice %3 {offsets = [2, 0], sizes = [1, 64], strides = [1, 1]} : vector<48x64xf32> to vector<1x64xf32>
    %367 = vector.extract_strided_slice %335 {offsets = [0, 3], sizes = [8, 64], strides = [1, 1]} : vector<10x128xf32> to vector<8x64xf32>
    %368 = vector.broadcast %366 : vector<1x64xf32> to vector<8x64xf32>
    %369 = arith.mulf %368, %367 : vector<8x64xf32>
    %370 = arith.addf %365, %369 : vector<8x64xf32>
    %c0_227 = arith.constant 0 : index
    %c0_228 = arith.constant 0 : index
    %c0_229 = arith.constant 0 : index
    %c0_230 = arith.constant 0 : index
    %371 = vector.load %arg7[%c0_227, %c0_228, %c0_229, %c0_230] : memref<1x1x8x64xf32, #tpu.memory_space<vmem>>, vector<1x1x8x64xf32>
    %372 = vector.shape_cast %371 : vector<1x1x8x64xf32> to vector<8x64xf32>
    %373 = vector.shape_cast %370 : vector<8x64xf32> to vector<1x1x8x64xf32>
    tpu.vector_store %arg7[%c0_227, %c0_228, %c0_229, %c0_230], %373 {strides = array<i32>} : memref<1x1x8x64xf32, #tpu.memory_space<vmem>>, vector<1x1x8x64xf32>,
    %c0_231 = arith.constant 0 : index
    %c0_232 = arith.constant 0 : index
    %c0_233 = arith.constant 0 : index
    %c0_234 = arith.constant 0 : index
    %374 = vector.load %arg7[%c0_231, %c0_232, %c0_233, %c0_234] : memref<1x1x8x64xf32, #tpu.memory_space<vmem>>, vector<1x1x8x64xf32>
    %375 = vector.shape_cast %374 : vector<1x1x8x64xf32> to vector<8x64xf32>
    %376 = vector.extract_strided_slice %3 {offsets = [3, 0], sizes = [1, 64], strides = [1, 1]} : vector<48x64xf32> to vector<1x64xf32>
    %377 = vector.extract_strided_slice %335 {offsets = [0, 4], sizes = [8, 64], strides = [1, 1]} : vector<10x128xf32> to vector<8x64xf32>
    %378 = vector.broadcast %376 : vector<1x64xf32> to vector<8x64xf32>
    %379 = arith.mulf %378, %377 : vector<8x64xf32>
    %380 = arith.addf %375, %379 : vector<8x64xf32>
    %c0_235 = arith.constant 0 : index
    %c0_236 = arith.constant 0 : index
    %c0_237 = arith.constant 0 : index
    %c0_238 = arith.constant 0 : index
    %381 = vector.load %arg7[%c0_235, %c0_236, %c0_237, %c0_238] : memref<1x1x8x64xf32, #tpu.memory_space<vmem>>, vector<1x1x8x64xf32>
    %382 = vector.shape_cast %381 : vector<1x1x8x64xf32> to vector<8x64xf32>
    %383 = vector.shape_cast %380 : vector<8x64xf32> to vector<1x1x8x64xf32>
    tpu.vector_store %arg7[%c0_235, %c0_236, %c0_237, %c0_238], %383 {strides = array<i32>} : memref<1x1x8x64xf32, #tpu.memory_space<vmem>>, vector<1x1x8x64xf32>,
    %c0_239 = arith.constant 0 : index
    %c0_240 = arith.constant 0 : index
    %c0_241 = arith.constant 0 : index
    %c0_242 = arith.constant 0 : index
    %384 = vector.load %arg7[%c0_239, %c0_240, %c0_241, %c0_242] : memref<1x1x8x64xf32, #tpu.memory_space<vmem>>, vector<1x1x8x64xf32>
    %385 = vector.shape_cast %384 : vector<1x1x8x64xf32> to vector<8x64xf32>
    %386 = vector.extract_strided_slice %3 {offsets = [4, 0], sizes = [1, 64], strides = [1, 1]} : vector<48x64xf32> to vector<1x64xf32>
    %387 = vector.extract_strided_slice %335 {offsets = [0, 5], sizes = [8, 64], strides = [1, 1]} : vector<10x128xf32> to vector<8x64xf32>
    %388 = vector.broadcast %386 : vector<1x64xf32> to vector<8x64xf32>
    %389 = arith.mulf %388, %387 : vector<8x64xf32>
    %390 = arith.addf %385, %389 : vector<8x64xf32>
    %c0_243 = arith.constant 0 : index
    %c0_244 = arith.constant 0 : index
    %c0_245 = arith.constant 0 : index
    %c0_246 = arith.constant 0 : index
    %391 = vector.load %arg7[%c0_243, %c0_244, %c0_245, %c0_246] : memref<1x1x8x64xf32, #tpu.memory_space<vmem>>, vector<1x1x8x64xf32>
    %392 = vector.shape_cast %391 : vector<1x1x8x64xf32> to vector<8x64xf32>
    %393 = vector.shape_cast %390 : vector<8x64xf32> to vector<1x1x8x64xf32>
    tpu.vector_store %arg7[%c0_243, %c0_244, %c0_245, %c0_246], %393 {strides = array<i32>} : memref<1x1x8x64xf32, #tpu.memory_space<vmem>>, vector<1x1x8x64xf32>,
    %c0_247 = arith.constant 0 : index
    %c0_248 = arith.constant 0 : index
    %c0_249 = arith.constant 0 : index
    %c0_250 = arith.constant 0 : index
    %394 = vector.load %arg7[%c0_247, %c0_248, %c0_249, %c0_250] : memref<1x1x8x64xf32, #tpu.memory_space<vmem>>, vector<1x1x8x64xf32>
    %395 = vector.shape_cast %394 : vector<1x1x8x64xf32> to vector<8x64xf32>
    %396 = vector.extract_strided_slice %3 {offsets = [5, 0], sizes = [1, 64], strides = [1, 1]} : vector<48x64xf32> to vector<1x64xf32>
    %397 = vector.extract_strided_slice %335 {offsets = [0, 6], sizes = [8, 64], strides = [1, 1]} : vector<10x128xf32> to vector<8x64xf32>
    %398 = vector.broadcast %396 : vector<1x64xf32> to vector<8x64xf32>
    %399 = arith.mulf %398, %397 : vector<8x64xf32>
    %400 = arith.addf %395, %399 : vector<8x64xf32>
    %c0_251 = arith.constant 0 : index
    %c0_252 = arith.constant 0 : index
    %c0_253 = arith.constant 0 : index
    %c0_254 = arith.constant 0 : index
    %401 = vector.load %arg7[%c0_251, %c0_252, %c0_253, %c0_254] : memref<1x1x8x64xf32, #tpu.memory_space<vmem>>, vector<1x1x8x64xf32>
    %402 = vector.shape_cast %401 : vector<1x1x8x64xf32> to vector<8x64xf32>
    %403 = vector.shape_cast %400 : vector<8x64xf32> to vector<1x1x8x64xf32>
    tpu.vector_store %arg7[%c0_251, %c0_252, %c0_253, %c0_254], %403 {strides = array<i32>} : memref<1x1x8x64xf32, #tpu.memory_space<vmem>>, vector<1x1x8x64xf32>,
    %c0_255 = arith.constant 0 : index
    %c0_256 = arith.constant 0 : index
    %c0_257 = arith.constant 0 : index
    %c0_258 = arith.constant 0 : index
    %404 = vector.load %arg7[%c0_255, %c0_256, %c0_257, %c0_258] : memref<1x1x8x64xf32, #tpu.memory_space<vmem>>, vector<1x1x8x64xf32>
    %405 = vector.shape_cast %404 : vector<1x1x8x64xf32> to vector<8x64xf32>
    %406 = vector.extract_strided_slice %3 {offsets = [6, 0], sizes = [1, 64], strides = [1, 1]} : vector<48x64xf32> to vector<1x64xf32>
    %407 = vector.extract_strided_slice %335 {offsets = [0, 7], sizes = [8, 64], strides = [1, 1]} : vector<10x128xf32> to vector<8x64xf32>
    %408 = vector.broadcast %406 : vector<1x64xf32> to vector<8x64xf32>
    %409 = arith.mulf %408, %407 : vector<8x64xf32>
    %410 = arith.addf %405, %409 : vector<8x64xf32>
    %c0_259 = arith.constant 0 : index
    %c0_260 = arith.constant 0 : index
    %c0_261 = arith.constant 0 : index
    %c0_262 = arith.constant 0 : index
    %411 = vector.load %arg7[%c0_259, %c0_260, %c0_261, %c0_262] : memref<1x1x8x64xf32, #tpu.memory_space<vmem>>, vector<1x1x8x64xf32>
    %412 = vector.shape_cast %411 : vector<1x1x8x64xf32> to vector<8x64xf32>
    %413 = vector.shape_cast %410 : vector<8x64xf32> to vector<1x1x8x64xf32>
    tpu.vector_store %arg7[%c0_259, %c0_260, %c0_261, %c0_262], %413 {strides = array<i32>} : memref<1x1x8x64xf32, #tpu.memory_space<vmem>>, vector<1x1x8x64xf32>,
    %c0_263 = arith.constant 0 : index
    %c0_264 = arith.constant 0 : index
    %c0_265 = arith.constant 0 : index
    %c0_266 = arith.constant 0 : index
    %414 = vector.load %arg7[%c0_263, %c0_264, %c0_265, %c0_266] : memref<1x1x8x64xf32, #tpu.memory_space<vmem>>, vector<1x1x8x64xf32>
    %415 = vector.shape_cast %414 : vector<1x1x8x64xf32> to vector<8x64xf32>
    %416 = vector.extract_strided_slice %3 {offsets = [7, 0], sizes = [1, 64], strides = [1, 1]} : vector<48x64xf32> to vector<1x64xf32>
    %417 = vector.extract_strided_slice %335 {offsets = [0, 8], sizes = [8, 64], strides = [1, 1]} : vector<10x128xf32> to vector<8x64xf32>
    %418 = vector.broadcast %416 : vector<1x64xf32> to vector<8x64xf32>
    %419 = arith.mulf %418, %417 : vector<8x64xf32>
    %420 = arith.addf %415, %419 : vector<8x64xf32>
    %c0_267 = arith.constant 0 : index
    %c0_268 = arith.constant 0 : index
    %c0_269 = arith.constant 0 : index
    %c0_270 = arith.constant 0 : index
    %421 = vector.load %arg7[%c0_267, %c0_268, %c0_269, %c0_270] : memref<1x1x8x64xf32, #tpu.memory_space<vmem>>, vector<1x1x8x64xf32>
    %422 = vector.shape_cast %421 : vector<1x1x8x64xf32> to vector<8x64xf32>
    %423 = vector.shape_cast %420 : vector<8x64xf32> to vector<1x1x8x64xf32>
    tpu.vector_store %arg7[%c0_267, %c0_268, %c0_269, %c0_270], %423 {strides = array<i32>} : memref<1x1x8x64xf32, #tpu.memory_space<vmem>>, vector<1x1x8x64xf32>,
    %c0_271 = arith.constant 0 : index
    %c0_272 = arith.constant 0 : index
    %c0_273 = arith.constant 0 : index
    %c0_274 = arith.constant 0 : index
    %424 = vector.load %arg7[%c0_271, %c0_272, %c0_273, %c0_274] : memref<1x1x8x64xf32, #tpu.memory_space<vmem>>, vector<1x1x8x64xf32>
    %425 = vector.shape_cast %424 : vector<1x1x8x64xf32> to vector<8x64xf32>
    %426 = vector.extract_strided_slice %3 {offsets = [8, 0], sizes = [1, 64], strides = [1, 1]} : vector<48x64xf32> to vector<1x64xf32>
    %427 = vector.extract_strided_slice %335 {offsets = [0, 9], sizes = [8, 64], strides = [1, 1]} : vector<10x128xf32> to vector<8x64xf32>
    %428 = vector.broadcast %426 : vector<1x64xf32> to vector<8x64xf32>
    %429 = arith.mulf %428, %427 : vector<8x64xf32>
    %430 = arith.addf %425, %429 : vector<8x64xf32>
    %c0_275 = arith.constant 0 : index
    %c0_276 = arith.constant 0 : index
    %c0_277 = arith.constant 0 : index
    %c0_278 = arith.constant 0 : index
    %431 = vector.load %arg7[%c0_275, %c0_276, %c0_277, %c0_278] : memref<1x1x8x64xf32, #tpu.memory_space<vmem>>, vector<1x1x8x64xf32>
    %432 = vector.shape_cast %431 : vector<1x1x8x64xf32> to vector<8x64xf32>
    %433 = vector.shape_cast %430 : vector<8x64xf32> to vector<1x1x8x64xf32>
    tpu.vector_store %arg7[%c0_275, %c0_276, %c0_277, %c0_278], %433 {strides = array<i32>} : memref<1x1x8x64xf32, #tpu.memory_space<vmem>>, vector<1x1x8x64xf32>,
    %c0_279 = arith.constant 0 : index
    %c0_280 = arith.constant 0 : index
    %c0_281 = arith.constant 0 : index
    %c0_282 = arith.constant 0 : index
    %434 = vector.load %arg7[%c0_279, %c0_280, %c0_281, %c0_282] : memref<1x1x8x64xf32, #tpu.memory_space<vmem>>, vector<1x1x8x64xf32>
    %435 = vector.shape_cast %434 : vector<1x1x8x64xf32> to vector<8x64xf32>
    %436 = vector.extract_strided_slice %3 {offsets = [9, 0], sizes = [1, 64], strides = [1, 1]} : vector<48x64xf32> to vector<1x64xf32>
    %437 = vector.extract_strided_slice %335 {offsets = [0, 10], sizes = [8, 64], strides = [1, 1]} : vector<10x128xf32> to vector<8x64xf32>
    %438 = vector.broadcast %436 : vector<1x64xf32> to vector<8x64xf32>
    %439 = arith.mulf %438, %437 : vector<8x64xf32>
    %440 = arith.addf %435, %439 : vector<8x64xf32>
    %c0_283 = arith.constant 0 : index
    %c0_284 = arith.constant 0 : index
    %c0_285 = arith.constant 0 : index
    %c0_286 = arith.constant 0 : index
    %441 = vector.load %arg7[%c0_283, %c0_284, %c0_285, %c0_286] : memref<1x1x8x64xf32, #tpu.memory_space<vmem>>, vector<1x1x8x64xf32>
    %442 = vector.shape_cast %441 : vector<1x1x8x64xf32> to vector<8x64xf32>
    %443 = vector.shape_cast %440 : vector<8x64xf32> to vector<1x1x8x64xf32>
    tpu.vector_store %arg7[%c0_283, %c0_284, %c0_285, %c0_286], %443 {strides = array<i32>} : memref<1x1x8x64xf32, #tpu.memory_space<vmem>>, vector<1x1x8x64xf32>,
    %c0_287 = arith.constant 0 : index
    %c0_288 = arith.constant 0 : index
    %c0_289 = arith.constant 0 : index
    %c0_290 = arith.constant 0 : index
    %444 = vector.load %arg7[%c0_287, %c0_288, %c0_289, %c0_290] : memref<1x1x8x64xf32, #tpu.memory_space<vmem>>, vector<1x1x8x64xf32>
    %445 = vector.shape_cast %444 : vector<1x1x8x64xf32> to vector<8x64xf32>
    %446 = vector.extract_strided_slice %3 {offsets = [10, 0], sizes = [1, 64], strides = [1, 1]} : vector<48x64xf32> to vector<1x64xf32>
    %447 = vector.extract_strided_slice %335 {offsets = [0, 11], sizes = [8, 64], strides = [1, 1]} : vector<10x128xf32> to vector<8x64xf32>
    %448 = vector.broadcast %446 : vector<1x64xf32> to vector<8x64xf32>
    %449 = arith.mulf %448, %447 : vector<8x64xf32>
    %450 = arith.addf %445, %449 : vector<8x64xf32>
    %c0_291 = arith.constant 0 : index
    %c0_292 = arith.constant 0 : index
    %c0_293 = arith.constant 0 : index
    %c0_294 = arith.constant 0 : index
    %451 = vector.load %arg7[%c0_291, %c0_292, %c0_293, %c0_294] : memref<1x1x8x64xf32, #tpu.memory_space<vmem>>, vector<1x1x8x64xf32>
    %452 = vector.shape_cast %451 : vector<1x1x8x64xf32> to vector<8x64xf32>
    %453 = vector.shape_cast %450 : vector<8x64xf32> to vector<1x1x8x64xf32>
    tpu.vector_store %arg7[%c0_291, %c0_292, %c0_293, %c0_294], %453 {strides = array<i32>} : memref<1x1x8x64xf32, #tpu.memory_space<vmem>>, vector<1x1x8x64xf32>,
    %c0_295 = arith.constant 0 : index
    %c0_296 = arith.constant 0 : index
    %c0_297 = arith.constant 0 : index
    %c0_298 = arith.constant 0 : index
    %454 = vector.load %arg7[%c0_295, %c0_296, %c0_297, %c0_298] : memref<1x1x8x64xf32, #tpu.memory_space<vmem>>, vector<1x1x8x64xf32>
    %455 = vector.shape_cast %454 : vector<1x1x8x64xf32> to vector<8x64xf32>
    %456 = vector.extract_strided_slice %3 {offsets = [11, 0], sizes = [1, 64], strides = [1, 1]} : vector<48x64xf32> to vector<1x64xf32>
    %457 = vector.extract_strided_slice %335 {offsets = [0, 12], sizes = [8, 64], strides = [1, 1]} : vector<10x128xf32> to vector<8x64xf32>
    %458 = vector.broadcast %456 : vector<1x64xf32> to vector<8x64xf32>
    %459 = arith.mulf %458, %457 : vector<8x64xf32>
    %460 = arith.addf %455, %459 : vector<8x64xf32>
    %c0_299 = arith.constant 0 : index
    %c0_300 = arith.constant 0 : index
    %c0_301 = arith.constant 0 : index
    %c0_302 = arith.constant 0 : index
    %461 = vector.load %arg7[%c0_299, %c0_300, %c0_301, %c0_302] : memref<1x1x8x64xf32, #tpu.memory_space<vmem>>, vector<1x1x8x64xf32>
    %462 = vector.shape_cast %461 : vector<1x1x8x64xf32> to vector<8x64xf32>
    %463 = vector.shape_cast %460 : vector<8x64xf32> to vector<1x1x8x64xf32>
    tpu.vector_store %arg7[%c0_299, %c0_300, %c0_301, %c0_302], %463 {strides = array<i32>} : memref<1x1x8x64xf32, #tpu.memory_space<vmem>>, vector<1x1x8x64xf32>,
    %c0_303 = arith.constant 0 : index
    %c0_304 = arith.constant 0 : index
    %c0_305 = arith.constant 0 : index
    %c0_306 = arith.constant 0 : index
    %464 = vector.load %arg7[%c0_303, %c0_304, %c0_305, %c0_306] : memref<1x1x8x64xf32, #tpu.memory_space<vmem>>, vector<1x1x8x64xf32>
    %465 = vector.shape_cast %464 : vector<1x1x8x64xf32> to vector<8x64xf32>
    %466 = vector.extract_strided_slice %3 {offsets = [12, 0], sizes = [1, 64], strides = [1, 1]} : vector<48x64xf32> to vector<1x64xf32>
    %467 = vector.extract_strided_slice %335 {offsets = [0, 13], sizes = [8, 64], strides = [1, 1]} : vector<10x128xf32> to vector<8x64xf32>
    %468 = vector.broadcast %466 : vector<1x64xf32> to vector<8x64xf32>
    %469 = arith.mulf %468, %467 : vector<8x64xf32>
    %470 = arith.addf %465, %469 : vector<8x64xf32>
    %c0_307 = arith.constant 0 : index
    %c0_308 = arith.constant 0 : index
    %c0_309 = arith.constant 0 : index
    %c0_310 = arith.constant 0 : index
    %471 = vector.load %arg7[%c0_307, %c0_308, %c0_309, %c0_310] : memref<1x1x8x64xf32, #tpu.memory_space<vmem>>, vector<1x1x8x64xf32>
    %472 = vector.shape_cast %471 : vector<1x1x8x64xf32> to vector<8x64xf32>
    %473 = vector.shape_cast %470 : vector<8x64xf32> to vector<1x1x8x64xf32>
    tpu.vector_store %arg7[%c0_307, %c0_308, %c0_309, %c0_310], %473 {strides = array<i32>} : memref<1x1x8x64xf32, #tpu.memory_space<vmem>>, vector<1x1x8x64xf32>,
    %c0_311 = arith.constant 0 : index
    %c0_312 = arith.constant 0 : index
    %c0_313 = arith.constant 0 : index
    %c0_314 = arith.constant 0 : index
    %474 = vector.load %arg7[%c0_311, %c0_312, %c0_313, %c0_314] : memref<1x1x8x64xf32, #tpu.memory_space<vmem>>, vector<1x1x8x64xf32>
    %475 = vector.shape_cast %474 : vector<1x1x8x64xf32> to vector<8x64xf32>
    %476 = vector.extract_strided_slice %3 {offsets = [13, 0], sizes = [1, 64], strides = [1, 1]} : vector<48x64xf32> to vector<1x64xf32>
    %477 = vector.extract_strided_slice %335 {offsets = [0, 14], sizes = [8, 64], strides = [1, 1]} : vector<10x128xf32> to vector<8x64xf32>
    %478 = vector.broadcast %476 : vector<1x64xf32> to vector<8x64xf32>
    %479 = arith.mulf %478, %477 : vector<8x64xf32>
    %480 = arith.addf %475, %479 : vector<8x64xf32>
    %c0_315 = arith.constant 0 : index
    %c0_316 = arith.constant 0 : index
    %c0_317 = arith.constant 0 : index
    %c0_318 = arith.constant 0 : index
    %481 = vector.load %arg7[%c0_315, %c0_316, %c0_317, %c0_318] : memref<1x1x8x64xf32, #tpu.memory_space<vmem>>, vector<1x1x8x64xf32>
    %482 = vector.shape_cast %481 : vector<1x1x8x64xf32> to vector<8x64xf32>
    %483 = vector.shape_cast %480 : vector<8x64xf32> to vector<1x1x8x64xf32>
    tpu.vector_store %arg7[%c0_315, %c0_316, %c0_317, %c0_318], %483 {strides = array<i32>} : memref<1x1x8x64xf32, #tpu.memory_space<vmem>>, vector<1x1x8x64xf32>,
    %c0_319 = arith.constant 0 : index
    %c0_320 = arith.constant 0 : index
    %c0_321 = arith.constant 0 : index
    %c0_322 = arith.constant 0 : index
    %484 = vector.load %arg7[%c0_319, %c0_320, %c0_321, %c0_322] : memref<1x1x8x64xf32, #tpu.memory_space<vmem>>, vector<1x1x8x64xf32>
    %485 = vector.shape_cast %484 : vector<1x1x8x64xf32> to vector<8x64xf32>
    %486 = vector.extract_strided_slice %3 {offsets = [14, 0], sizes = [1, 64], strides = [1, 1]} : vector<48x64xf32> to vector<1x64xf32>
    %487 = vector.extract_strided_slice %335 {offsets = [0, 15], sizes = [8, 64], strides = [1, 1]} : vector<10x128xf32> to vector<8x64xf32>
    %488 = vector.broadcast %486 : vector<1x64xf32> to vector<8x64xf32>
    %489 = arith.mulf %488, %487 : vector<8x64xf32>
    %490 = arith.addf %485, %489 : vector<8x64xf32>
    %c0_323 = arith.constant 0 : index
    %c0_324 = arith.constant 0 : index
    %c0_325 = arith.constant 0 : index
    %c0_326 = arith.constant 0 : index
    %491 = vector.load %arg7[%c0_323, %c0_324, %c0_325, %c0_326] : memref<1x1x8x64xf32, #tpu.memory_space<vmem>>, vector<1x1x8x64xf32>
    %492 = vector.shape_cast %491 : vector<1x1x8x64xf32> to vector<8x64xf32>
    %493 = vector.shape_cast %490 : vector<8x64xf32> to vector<1x1x8x64xf32>
    tpu.vector_store %arg7[%c0_323, %c0_324, %c0_325, %c0_326], %493 {strides = array<i32>} : memref<1x1x8x64xf32, #tpu.memory_space<vmem>>, vector<1x1x8x64xf32>,
    %c0_327 = arith.constant 0 : index
    %c0_328 = arith.constant 0 : index
    %c0_329 = arith.constant 0 : index
    %c0_330 = arith.constant 0 : index
    %494 = vector.load %arg7[%c0_327, %c0_328, %c0_329, %c0_330] : memref<1x1x8x64xf32, #tpu.memory_space<vmem>>, vector<1x1x8x64xf32>
    %495 = vector.shape_cast %494 : vector<1x1x8x64xf32> to vector<8x64xf32>
    %496 = vector.extract_strided_slice %3 {offsets = [15, 0], sizes = [1, 64], strides = [1, 1]} : vector<48x64xf32> to vector<1x64xf32>
    %497 = vector.extract_strided_slice %335 {offsets = [1, 1], sizes = [8, 64], strides = [1, 1]} : vector<10x128xf32> to vector<8x64xf32>
    %498 = vector.broadcast %496 : vector<1x64xf32> to vector<8x64xf32>
    %499 = arith.mulf %498, %497 : vector<8x64xf32>
    %500 = arith.addf %495, %499 : vector<8x64xf32>
    %c0_331 = arith.constant 0 : index
    %c0_332 = arith.constant 0 : index
    %c0_333 = arith.constant 0 : index
    %c0_334 = arith.constant 0 : index
    %501 = vector.load %arg7[%c0_331, %c0_332, %c0_333, %c0_334] : memref<1x1x8x64xf32, #tpu.memory_space<vmem>>, vector<1x1x8x64xf32>
    %502 = vector.shape_cast %501 : vector<1x1x8x64xf32> to vector<8x64xf32>
    %503 = vector.shape_cast %500 : vector<8x64xf32> to vector<1x1x8x64xf32>
    tpu.vector_store %arg7[%c0_331, %c0_332, %c0_333, %c0_334], %503 {strides = array<i32>} : memref<1x1x8x64xf32, #tpu.memory_space<vmem>>, vector<1x1x8x64xf32>,
    %c0_335 = arith.constant 0 : index
    %c0_336 = arith.constant 0 : index
    %c0_337 = arith.constant 0 : index
    %c0_338 = arith.constant 0 : index
    %504 = vector.load %arg7[%c0_335, %c0_336, %c0_337, %c0_338] : memref<1x1x8x64xf32, #tpu.memory_space<vmem>>, vector<1x1x8x64xf32>
    %505 = vector.shape_cast %504 : vector<1x1x8x64xf32> to vector<8x64xf32>
    %506 = vector.extract_strided_slice %3 {offsets = [16, 0], sizes = [1, 64], strides = [1, 1]} : vector<48x64xf32> to vector<1x64xf32>
    %507 = vector.extract_strided_slice %335 {offsets = [1, 2], sizes = [8, 64], strides = [1, 1]} : vector<10x128xf32> to vector<8x64xf32>
    %508 = vector.broadcast %506 : vector<1x64xf32> to vector<8x64xf32>
    %509 = arith.mulf %508, %507 : vector<8x64xf32>
    %510 = arith.addf %505, %509 : vector<8x64xf32>
    %c0_339 = arith.constant 0 : index
    %c0_340 = arith.constant 0 : index
    %c0_341 = arith.constant 0 : index
    %c0_342 = arith.constant 0 : index
    %511 = vector.load %arg7[%c0_339, %c0_340, %c0_341, %c0_342] : memref<1x1x8x64xf32, #tpu.memory_space<vmem>>, vector<1x1x8x64xf32>
    %512 = vector.shape_cast %511 : vector<1x1x8x64xf32> to vector<8x64xf32>
    %513 = vector.shape_cast %510 : vector<8x64xf32> to vector<1x1x8x64xf32>
    tpu.vector_store %arg7[%c0_339, %c0_340, %c0_341, %c0_342], %513 {strides = array<i32>} : memref<1x1x8x64xf32, #tpu.memory_space<vmem>>, vector<1x1x8x64xf32>,
    %c0_343 = arith.constant 0 : index
    %c0_344 = arith.constant 0 : index
    %c0_345 = arith.constant 0 : index
    %c0_346 = arith.constant 0 : index
    %514 = vector.load %arg7[%c0_343, %c0_344, %c0_345, %c0_346] : memref<1x1x8x64xf32, #tpu.memory_space<vmem>>, vector<1x1x8x64xf32>
    %515 = vector.shape_cast %514 : vector<1x1x8x64xf32> to vector<8x64xf32>
    %516 = vector.extract_strided_slice %3 {offsets = [17, 0], sizes = [1, 64], strides = [1, 1]} : vector<48x64xf32> to vector<1x64xf32>
    %517 = vector.extract_strided_slice %335 {offsets = [1, 3], sizes = [8, 64], strides = [1, 1]} : vector<10x128xf32> to vector<8x64xf32>
    %518 = vector.broadcast %516 : vector<1x64xf32> to vector<8x64xf32>
    %519 = arith.mulf %518, %517 : vector<8x64xf32>
    %520 = arith.addf %515, %519 : vector<8x64xf32>
    %c0_347 = arith.constant 0 : index
    %c0_348 = arith.constant 0 : index
    %c0_349 = arith.constant 0 : index
    %c0_350 = arith.constant 0 : index
    %521 = vector.load %arg7[%c0_347, %c0_348, %c0_349, %c0_350] : memref<1x1x8x64xf32, #tpu.memory_space<vmem>>, vector<1x1x8x64xf32>
    %522 = vector.shape_cast %521 : vector<1x1x8x64xf32> to vector<8x64xf32>
    %523 = vector.shape_cast %520 : vector<8x64xf32> to vector<1x1x8x64xf32>
    tpu.vector_store %arg7[%c0_347, %c0_348, %c0_349, %c0_350], %523 {strides = array<i32>} : memref<1x1x8x64xf32, #tpu.memory_space<vmem>>, vector<1x1x8x64xf32>,
    %c0_351 = arith.constant 0 : index
    %c0_352 = arith.constant 0 : index
    %c0_353 = arith.constant 0 : index
    %c0_354 = arith.constant 0 : index
    %524 = vector.load %arg7[%c0_351, %c0_352, %c0_353, %c0_354] : memref<1x1x8x64xf32, #tpu.memory_space<vmem>>, vector<1x1x8x64xf32>
    %525 = vector.shape_cast %524 : vector<1x1x8x64xf32> to vector<8x64xf32>
    %526 = vector.extract_strided_slice %3 {offsets = [18, 0], sizes = [1, 64], strides = [1, 1]} : vector<48x64xf32> to vector<1x64xf32>
    %527 = vector.extract_strided_slice %335 {offsets = [1, 4], sizes = [8, 64], strides = [1, 1]} : vector<10x128xf32> to vector<8x64xf32>
    %528 = vector.broadcast %526 : vector<1x64xf32> to vector<8x64xf32>
    %529 = arith.mulf %528, %527 : vector<8x64xf32>
    %530 = arith.addf %525, %529 : vector<8x64xf32>
    %c0_355 = arith.constant 0 : index
    %c0_356 = arith.constant 0 : index
    %c0_357 = arith.constant 0 : index
    %c0_358 = arith.constant 0 : index
    %531 = vector.load %arg7[%c0_355, %c0_356, %c0_357, %c0_358] : memref<1x1x8x64xf32, #tpu.memory_space<vmem>>, vector<1x1x8x64xf32>
    %532 = vector.shape_cast %531 : vector<1x1x8x64xf32> to vector<8x64xf32>
    %533 = vector.shape_cast %530 : vector<8x64xf32> to vector<1x1x8x64xf32>
    tpu.vector_store %arg7[%c0_355, %c0_356, %c0_357, %c0_358], %533 {strides = array<i32>} : memref<1x1x8x64xf32, #tpu.memory_space<vmem>>, vector<1x1x8x64xf32>,
    %c0_359 = arith.constant 0 : index
    %c0_360 = arith.constant 0 : index
    %c0_361 = arith.constant 0 : index
    %c0_362 = arith.constant 0 : index
    %534 = vector.load %arg7[%c0_359, %c0_360, %c0_361, %c0_362] : memref<1x1x8x64xf32, #tpu.memory_space<vmem>>, vector<1x1x8x64xf32>
    %535 = vector.shape_cast %534 : vector<1x1x8x64xf32> to vector<8x64xf32>
    %536 = vector.extract_strided_slice %3 {offsets = [19, 0], sizes = [1, 64], strides = [1, 1]} : vector<48x64xf32> to vector<1x64xf32>
    %537 = vector.extract_strided_slice %335 {offsets = [1, 5], sizes = [8, 64], strides = [1, 1]} : vector<10x128xf32> to vector<8x64xf32>
    %538 = vector.broadcast %536 : vector<1x64xf32> to vector<8x64xf32>
    %539 = arith.mulf %538, %537 : vector<8x64xf32>
    %540 = arith.addf %535, %539 : vector<8x64xf32>
    %c0_363 = arith.constant 0 : index
    %c0_364 = arith.constant 0 : index
    %c0_365 = arith.constant 0 : index
    %c0_366 = arith.constant 0 : index
    %541 = vector.load %arg7[%c0_363, %c0_364, %c0_365, %c0_366] : memref<1x1x8x64xf32, #tpu.memory_space<vmem>>, vector<1x1x8x64xf32>
    %542 = vector.shape_cast %541 : vector<1x1x8x64xf32> to vector<8x64xf32>
    %543 = vector.shape_cast %540 : vector<8x64xf32> to vector<1x1x8x64xf32>
    tpu.vector_store %arg7[%c0_363, %c0_364, %c0_365, %c0_366], %543 {strides = array<i32>} : memref<1x1x8x64xf32, #tpu.memory_space<vmem>>, vector<1x1x8x64xf32>,
    %c0_367 = arith.constant 0 : index
    %c0_368 = arith.constant 0 : index
    %c0_369 = arith.constant 0 : index
    %c0_370 = arith.constant 0 : index
    %544 = vector.load %arg7[%c0_367, %c0_368, %c0_369, %c0_370] : memref<1x1x8x64xf32, #tpu.memory_space<vmem>>, vector<1x1x8x64xf32>
    %545 = vector.shape_cast %544 : vector<1x1x8x64xf32> to vector<8x64xf32>
    %546 = vector.extract_strided_slice %3 {offsets = [20, 0], sizes = [1, 64], strides = [1, 1]} : vector<48x64xf32> to vector<1x64xf32>
    %547 = vector.extract_strided_slice %335 {offsets = [1, 6], sizes = [8, 64], strides = [1, 1]} : vector<10x128xf32> to vector<8x64xf32>
    %548 = vector.broadcast %546 : vector<1x64xf32> to vector<8x64xf32>
    %549 = arith.mulf %548, %547 : vector<8x64xf32>
    %550 = arith.addf %545, %549 : vector<8x64xf32>
    %c0_371 = arith.constant 0 : index
    %c0_372 = arith.constant 0 : index
    %c0_373 = arith.constant 0 : index
    %c0_374 = arith.constant 0 : index
    %551 = vector.load %arg7[%c0_371, %c0_372, %c0_373, %c0_374] : memref<1x1x8x64xf32, #tpu.memory_space<vmem>>, vector<1x1x8x64xf32>
    %552 = vector.shape_cast %551 : vector<1x1x8x64xf32> to vector<8x64xf32>
    %553 = vector.shape_cast %550 : vector<8x64xf32> to vector<1x1x8x64xf32>
    tpu.vector_store %arg7[%c0_371, %c0_372, %c0_373, %c0_374], %553 {strides = array<i32>} : memref<1x1x8x64xf32, #tpu.memory_space<vmem>>, vector<1x1x8x64xf32>,
    %c0_375 = arith.constant 0 : index
    %c0_376 = arith.constant 0 : index
    %c0_377 = arith.constant 0 : index
    %c0_378 = arith.constant 0 : index
    %554 = vector.load %arg7[%c0_375, %c0_376, %c0_377, %c0_378] : memref<1x1x8x64xf32, #tpu.memory_space<vmem>>, vector<1x1x8x64xf32>
    %555 = vector.shape_cast %554 : vector<1x1x8x64xf32> to vector<8x64xf32>
    %556 = vector.extract_strided_slice %3 {offsets = [21, 0], sizes = [1, 64], strides = [1, 1]} : vector<48x64xf32> to vector<1x64xf32>
    %557 = vector.extract_strided_slice %335 {offsets = [1, 7], sizes = [8, 64], strides = [1, 1]} : vector<10x128xf32> to vector<8x64xf32>
    %558 = vector.broadcast %556 : vector<1x64xf32> to vector<8x64xf32>
    %559 = arith.mulf %558, %557 : vector<8x64xf32>
    %560 = arith.addf %555, %559 : vector<8x64xf32>
    %c0_379 = arith.constant 0 : index
    %c0_380 = arith.constant 0 : index
    %c0_381 = arith.constant 0 : index
    %c0_382 = arith.constant 0 : index
    %561 = vector.load %arg7[%c0_379, %c0_380, %c0_381, %c0_382] : memref<1x1x8x64xf32, #tpu.memory_space<vmem>>, vector<1x1x8x64xf32>
    %562 = vector.shape_cast %561 : vector<1x1x8x64xf32> to vector<8x64xf32>
    %563 = vector.shape_cast %560 : vector<8x64xf32> to vector<1x1x8x64xf32>
    tpu.vector_store %arg7[%c0_379, %c0_380, %c0_381, %c0_382], %563 {strides = array<i32>} : memref<1x1x8x64xf32, #tpu.memory_space<vmem>>, vector<1x1x8x64xf32>,
    %c0_383 = arith.constant 0 : index
    %c0_384 = arith.constant 0 : index
    %c0_385 = arith.constant 0 : index
    %c0_386 = arith.constant 0 : index
    %564 = vector.load %arg7[%c0_383, %c0_384, %c0_385, %c0_386] : memref<1x1x8x64xf32, #tpu.memory_space<vmem>>, vector<1x1x8x64xf32>
    %565 = vector.shape_cast %564 : vector<1x1x8x64xf32> to vector<8x64xf32>
    %566 = vector.extract_strided_slice %3 {offsets = [22, 0], sizes = [1, 64], strides = [1, 1]} : vector<48x64xf32> to vector<1x64xf32>
    %567 = vector.extract_strided_slice %335 {offsets = [1, 8], sizes = [8, 64], strides = [1, 1]} : vector<10x128xf32> to vector<8x64xf32>
    %568 = vector.broadcast %566 : vector<1x64xf32> to vector<8x64xf32>
    %569 = arith.mulf %568, %567 : vector<8x64xf32>
    %570 = arith.addf %565, %569 : vector<8x64xf32>
    %c0_387 = arith.constant 0 : index
    %c0_388 = arith.constant 0 : index
    %c0_389 = arith.constant 0 : index
    %c0_390 = arith.constant 0 : index
    %571 = vector.load %arg7[%c0_387, %c0_388, %c0_389, %c0_390] : memref<1x1x8x64xf32, #tpu.memory_space<vmem>>, vector<1x1x8x64xf32>
    %572 = vector.shape_cast %571 : vector<1x1x8x64xf32> to vector<8x64xf32>
    %573 = vector.shape_cast %570 : vector<8x64xf32> to vector<1x1x8x64xf32>
    tpu.vector_store %arg7[%c0_387, %c0_388, %c0_389, %c0_390], %573 {strides = array<i32>} : memref<1x1x8x64xf32, #tpu.memory_space<vmem>>, vector<1x1x8x64xf32>,
    %c0_391 = arith.constant 0 : index
    %c0_392 = arith.constant 0 : index
    %c0_393 = arith.constant 0 : index
    %c0_394 = arith.constant 0 : index
    %574 = vector.load %arg7[%c0_391, %c0_392, %c0_393, %c0_394] : memref<1x1x8x64xf32, #tpu.memory_space<vmem>>, vector<1x1x8x64xf32>
    %575 = vector.shape_cast %574 : vector<1x1x8x64xf32> to vector<8x64xf32>
    %576 = vector.extract_strided_slice %3 {offsets = [23, 0], sizes = [1, 64], strides = [1, 1]} : vector<48x64xf32> to vector<1x64xf32>
    %577 = vector.extract_strided_slice %335 {offsets = [1, 9], sizes = [8, 64], strides = [1, 1]} : vector<10x128xf32> to vector<8x64xf32>
    %578 = vector.broadcast %576 : vector<1x64xf32> to vector<8x64xf32>
    %579 = arith.mulf %578, %577 : vector<8x64xf32>
    %580 = arith.addf %575, %579 : vector<8x64xf32>
    %c0_395 = arith.constant 0 : index
    %c0_396 = arith.constant 0 : index
    %c0_397 = arith.constant 0 : index
    %c0_398 = arith.constant 0 : index
    %581 = vector.load %arg7[%c0_395, %c0_396, %c0_397, %c0_398] : memref<1x1x8x64xf32, #tpu.memory_space<vmem>>, vector<1x1x8x64xf32>
    %582 = vector.shape_cast %581 : vector<1x1x8x64xf32> to vector<8x64xf32>
    %583 = vector.shape_cast %580 : vector<8x64xf32> to vector<1x1x8x64xf32>
    tpu.vector_store %arg7[%c0_395, %c0_396, %c0_397, %c0_398], %583 {strides = array<i32>} : memref<1x1x8x64xf32, #tpu.memory_space<vmem>>, vector<1x1x8x64xf32>,
    %c0_399 = arith.constant 0 : index
    %c0_400 = arith.constant 0 : index
    %c0_401 = arith.constant 0 : index
    %c0_402 = arith.constant 0 : index
    %584 = vector.load %arg7[%c0_399, %c0_400, %c0_401, %c0_402] : memref<1x1x8x64xf32, #tpu.memory_space<vmem>>, vector<1x1x8x64xf32>
    %585 = vector.shape_cast %584 : vector<1x1x8x64xf32> to vector<8x64xf32>
    %586 = vector.extract_strided_slice %3 {offsets = [24, 0], sizes = [1, 64], strides = [1, 1]} : vector<48x64xf32> to vector<1x64xf32>
    %587 = vector.extract_strided_slice %335 {offsets = [1, 10], sizes = [8, 64], strides = [1, 1]} : vector<10x128xf32> to vector<8x64xf32>
    %588 = vector.broadcast %586 : vector<1x64xf32> to vector<8x64xf32>
    %589 = arith.mulf %588, %587 : vector<8x64xf32>
    %590 = arith.addf %585, %589 : vector<8x64xf32>
    %c0_403 = arith.constant 0 : index
    %c0_404 = arith.constant 0 : index
    %c0_405 = arith.constant 0 : index
    %c0_406 = arith.constant 0 : index
    %591 = vector.load %arg7[%c0_403, %c0_404, %c0_405, %c0_406] : memref<1x1x8x64xf32, #tpu.memory_space<vmem>>, vector<1x1x8x64xf32>
    %592 = vector.shape_cast %591 : vector<1x1x8x64xf32> to vector<8x64xf32>
    %593 = vector.shape_cast %590 : vector<8x64xf32> to vector<1x1x8x64xf32>
    tpu.vector_store %arg7[%c0_403, %c0_404, %c0_405, %c0_406], %593 {strides = array<i32>} : memref<1x1x8x64xf32, #tpu.memory_space<vmem>>, vector<1x1x8x64xf32>,
    %c0_407 = arith.constant 0 : index
    %c0_408 = arith.constant 0 : index
    %c0_409 = arith.constant 0 : index
    %c0_410 = arith.constant 0 : index
    %594 = vector.load %arg7[%c0_407, %c0_408, %c0_409, %c0_410] : memref<1x1x8x64xf32, #tpu.memory_space<vmem>>, vector<1x1x8x64xf32>
    %595 = vector.shape_cast %594 : vector<1x1x8x64xf32> to vector<8x64xf32>
    %596 = vector.extract_strided_slice %3 {offsets = [25, 0], sizes = [1, 64], strides = [1, 1]} : vector<48x64xf32> to vector<1x64xf32>
    %597 = vector.extract_strided_slice %335 {offsets = [1, 11], sizes = [8, 64], strides = [1, 1]} : vector<10x128xf32> to vector<8x64xf32>
    %598 = vector.broadcast %596 : vector<1x64xf32> to vector<8x64xf32>
    %599 = arith.mulf %598, %597 : vector<8x64xf32>
    %600 = arith.addf %595, %599 : vector<8x64xf32>
    %c0_411 = arith.constant 0 : index
    %c0_412 = arith.constant 0 : index
    %c0_413 = arith.constant 0 : index
    %c0_414 = arith.constant 0 : index
    %601 = vector.load %arg7[%c0_411, %c0_412, %c0_413, %c0_414] : memref<1x1x8x64xf32, #tpu.memory_space<vmem>>, vector<1x1x8x64xf32>
    %602 = vector.shape_cast %601 : vector<1x1x8x64xf32> to vector<8x64xf32>
    %603 = vector.shape_cast %600 : vector<8x64xf32> to vector<1x1x8x64xf32>
    tpu.vector_store %arg7[%c0_411, %c0_412, %c0_413, %c0_414], %603 {strides = array<i32>} : memref<1x1x8x64xf32, #tpu.memory_space<vmem>>, vector<1x1x8x64xf32>,
    %c0_415 = arith.constant 0 : index
    %c0_416 = arith.constant 0 : index
    %c0_417 = arith.constant 0 : index
    %c0_418 = arith.constant 0 : index
    %604 = vector.load %arg7[%c0_415, %c0_416, %c0_417, %c0_418] : memref<1x1x8x64xf32, #tpu.memory_space<vmem>>, vector<1x1x8x64xf32>
    %605 = vector.shape_cast %604 : vector<1x1x8x64xf32> to vector<8x64xf32>
    %606 = vector.extract_strided_slice %3 {offsets = [26, 0], sizes = [1, 64], strides = [1, 1]} : vector<48x64xf32> to vector<1x64xf32>
    %607 = vector.extract_strided_slice %335 {offsets = [1, 12], sizes = [8, 64], strides = [1, 1]} : vector<10x128xf32> to vector<8x64xf32>
    %608 = vector.broadcast %606 : vector<1x64xf32> to vector<8x64xf32>
    %609 = arith.mulf %608, %607 : vector<8x64xf32>
    %610 = arith.addf %605, %609 : vector<8x64xf32>
    %c0_419 = arith.constant 0 : index
    %c0_420 = arith.constant 0 : index
    %c0_421 = arith.constant 0 : index
    %c0_422 = arith.constant 0 : index
    %611 = vector.load %arg7[%c0_419, %c0_420, %c0_421, %c0_422] : memref<1x1x8x64xf32, #tpu.memory_space<vmem>>, vector<1x1x8x64xf32>
    %612 = vector.shape_cast %611 : vector<1x1x8x64xf32> to vector<8x64xf32>
    %613 = vector.shape_cast %610 : vector<8x64xf32> to vector<1x1x8x64xf32>
    tpu.vector_store %arg7[%c0_419, %c0_420, %c0_421, %c0_422], %613 {strides = array<i32>} : memref<1x1x8x64xf32, #tpu.memory_space<vmem>>, vector<1x1x8x64xf32>,
    %c0_423 = arith.constant 0 : index
    %c0_424 = arith.constant 0 : index
    %c0_425 = arith.constant 0 : index
    %c0_426 = arith.constant 0 : index
    %614 = vector.load %arg7[%c0_423, %c0_424, %c0_425, %c0_426] : memref<1x1x8x64xf32, #tpu.memory_space<vmem>>, vector<1x1x8x64xf32>
    %615 = vector.shape_cast %614 : vector<1x1x8x64xf32> to vector<8x64xf32>
    %616 = vector.extract_strided_slice %3 {offsets = [27, 0], sizes = [1, 64], strides = [1, 1]} : vector<48x64xf32> to vector<1x64xf32>
    %617 = vector.extract_strided_slice %335 {offsets = [1, 13], sizes = [8, 64], strides = [1, 1]} : vector<10x128xf32> to vector<8x64xf32>
    %618 = vector.broadcast %616 : vector<1x64xf32> to vector<8x64xf32>
    %619 = arith.mulf %618, %617 : vector<8x64xf32>
    %620 = arith.addf %615, %619 : vector<8x64xf32>
    %c0_427 = arith.constant 0 : index
    %c0_428 = arith.constant 0 : index
    %c0_429 = arith.constant 0 : index
    %c0_430 = arith.constant 0 : index
    %621 = vector.load %arg7[%c0_427, %c0_428, %c0_429, %c0_430] : memref<1x1x8x64xf32, #tpu.memory_space<vmem>>, vector<1x1x8x64xf32>
    %622 = vector.shape_cast %621 : vector<1x1x8x64xf32> to vector<8x64xf32>
    %623 = vector.shape_cast %620 : vector<8x64xf32> to vector<1x1x8x64xf32>
    tpu.vector_store %arg7[%c0_427, %c0_428, %c0_429, %c0_430], %623 {strides = array<i32>} : memref<1x1x8x64xf32, #tpu.memory_space<vmem>>, vector<1x1x8x64xf32>,
    %c0_431 = arith.constant 0 : index
    %c0_432 = arith.constant 0 : index
    %c0_433 = arith.constant 0 : index
    %c0_434 = arith.constant 0 : index
    %624 = vector.load %arg7[%c0_431, %c0_432, %c0_433, %c0_434] : memref<1x1x8x64xf32, #tpu.memory_space<vmem>>, vector<1x1x8x64xf32>
    %625 = vector.shape_cast %624 : vector<1x1x8x64xf32> to vector<8x64xf32>
    %626 = vector.extract_strided_slice %3 {offsets = [28, 0], sizes = [1, 64], strides = [1, 1]} : vector<48x64xf32> to vector<1x64xf32>
    %627 = vector.extract_strided_slice %335 {offsets = [1, 14], sizes = [8, 64], strides = [1, 1]} : vector<10x128xf32> to vector<8x64xf32>
    %628 = vector.broadcast %626 : vector<1x64xf32> to vector<8x64xf32>
    %629 = arith.mulf %628, %627 : vector<8x64xf32>
    %630 = arith.addf %625, %629 : vector<8x64xf32>
    %c0_435 = arith.constant 0 : index
    %c0_436 = arith.constant 0 : index
    %c0_437 = arith.constant 0 : index
    %c0_438 = arith.constant 0 : index
    %631 = vector.load %arg7[%c0_435, %c0_436, %c0_437, %c0_438] : memref<1x1x8x64xf32, #tpu.memory_space<vmem>>, vector<1x1x8x64xf32>
    %632 = vector.shape_cast %631 : vector<1x1x8x64xf32> to vector<8x64xf32>
    %633 = vector.shape_cast %630 : vector<8x64xf32> to vector<1x1x8x64xf32>
    tpu.vector_store %arg7[%c0_435, %c0_436, %c0_437, %c0_438], %633 {strides = array<i32>} : memref<1x1x8x64xf32, #tpu.memory_space<vmem>>, vector<1x1x8x64xf32>,
    %c0_439 = arith.constant 0 : index
    %c0_440 = arith.constant 0 : index
    %c0_441 = arith.constant 0 : index
    %c0_442 = arith.constant 0 : index
    %634 = vector.load %arg7[%c0_439, %c0_440, %c0_441, %c0_442] : memref<1x1x8x64xf32, #tpu.memory_space<vmem>>, vector<1x1x8x64xf32>
    %635 = vector.shape_cast %634 : vector<1x1x8x64xf32> to vector<8x64xf32>
    %636 = vector.extract_strided_slice %3 {offsets = [29, 0], sizes = [1, 64], strides = [1, 1]} : vector<48x64xf32> to vector<1x64xf32>
    %637 = vector.extract_strided_slice %335 {offsets = [1, 15], sizes = [8, 64], strides = [1, 1]} : vector<10x128xf32> to vector<8x64xf32>
    %638 = vector.broadcast %636 : vector<1x64xf32> to vector<8x64xf32>
    %639 = arith.mulf %638, %637 : vector<8x64xf32>
    %640 = arith.addf %635, %639 : vector<8x64xf32>
    %c0_443 = arith.constant 0 : index
    %c0_444 = arith.constant 0 : index
    %c0_445 = arith.constant 0 : index
    %c0_446 = arith.constant 0 : index
    %641 = vector.load %arg7[%c0_443, %c0_444, %c0_445, %c0_446] : memref<1x1x8x64xf32, #tpu.memory_space<vmem>>, vector<1x1x8x64xf32>
    %642 = vector.shape_cast %641 : vector<1x1x8x64xf32> to vector<8x64xf32>
    %643 = vector.shape_cast %640 : vector<8x64xf32> to vector<1x1x8x64xf32>
    tpu.vector_store %arg7[%c0_443, %c0_444, %c0_445, %c0_446], %643 {strides = array<i32>} : memref<1x1x8x64xf32, #tpu.memory_space<vmem>>, vector<1x1x8x64xf32>,
    %c0_447 = arith.constant 0 : index
    %c0_448 = arith.constant 0 : index
    %c0_449 = arith.constant 0 : index
    %c0_450 = arith.constant 0 : index
    %644 = vector.load %arg7[%c0_447, %c0_448, %c0_449, %c0_450] : memref<1x1x8x64xf32, #tpu.memory_space<vmem>>, vector<1x1x8x64xf32>
    %645 = vector.shape_cast %644 : vector<1x1x8x64xf32> to vector<8x64xf32>
    %646 = vector.extract_strided_slice %3 {offsets = [30, 0], sizes = [1, 64], strides = [1, 1]} : vector<48x64xf32> to vector<1x64xf32>
    %647 = vector.extract_strided_slice %335 {offsets = [2, 1], sizes = [8, 64], strides = [1, 1]} : vector<10x128xf32> to vector<8x64xf32>
    %648 = vector.broadcast %646 : vector<1x64xf32> to vector<8x64xf32>
    %649 = arith.mulf %648, %647 : vector<8x64xf32>
    %650 = arith.addf %645, %649 : vector<8x64xf32>
    %c0_451 = arith.constant 0 : index
    %c0_452 = arith.constant 0 : index
    %c0_453 = arith.constant 0 : index
    %c0_454 = arith.constant 0 : index
    %651 = vector.load %arg7[%c0_451, %c0_452, %c0_453, %c0_454] : memref<1x1x8x64xf32, #tpu.memory_space<vmem>>, vector<1x1x8x64xf32>
    %652 = vector.shape_cast %651 : vector<1x1x8x64xf32> to vector<8x64xf32>
    %653 = vector.shape_cast %650 : vector<8x64xf32> to vector<1x1x8x64xf32>
    tpu.vector_store %arg7[%c0_451, %c0_452, %c0_453, %c0_454], %653 {strides = array<i32>} : memref<1x1x8x64xf32, #tpu.memory_space<vmem>>, vector<1x1x8x64xf32>,
    %c0_455 = arith.constant 0 : index
    %c0_456 = arith.constant 0 : index
    %c0_457 = arith.constant 0 : index
    %c0_458 = arith.constant 0 : index
    %654 = vector.load %arg7[%c0_455, %c0_456, %c0_457, %c0_458] : memref<1x1x8x64xf32, #tpu.memory_space<vmem>>, vector<1x1x8x64xf32>
    %655 = vector.shape_cast %654 : vector<1x1x8x64xf32> to vector<8x64xf32>
    %656 = vector.extract_strided_slice %3 {offsets = [31, 0], sizes = [1, 64], strides = [1, 1]} : vector<48x64xf32> to vector<1x64xf32>
    %657 = vector.extract_strided_slice %335 {offsets = [2, 2], sizes = [8, 64], strides = [1, 1]} : vector<10x128xf32> to vector<8x64xf32>
    %658 = vector.broadcast %656 : vector<1x64xf32> to vector<8x64xf32>
    %659 = arith.mulf %658, %657 : vector<8x64xf32>
    %660 = arith.addf %655, %659 : vector<8x64xf32>
    %c0_459 = arith.constant 0 : index
    %c0_460 = arith.constant 0 : index
    %c0_461 = arith.constant 0 : index
    %c0_462 = arith.constant 0 : index
    %661 = vector.load %arg7[%c0_459, %c0_460, %c0_461, %c0_462] : memref<1x1x8x64xf32, #tpu.memory_space<vmem>>, vector<1x1x8x64xf32>
    %662 = vector.shape_cast %661 : vector<1x1x8x64xf32> to vector<8x64xf32>
    %663 = vector.shape_cast %660 : vector<8x64xf32> to vector<1x1x8x64xf32>
    tpu.vector_store %arg7[%c0_459, %c0_460, %c0_461, %c0_462], %663 {strides = array<i32>} : memref<1x1x8x64xf32, #tpu.memory_space<vmem>>, vector<1x1x8x64xf32>,
    %c0_463 = arith.constant 0 : index
    %c0_464 = arith.constant 0 : index
    %c0_465 = arith.constant 0 : index
    %c0_466 = arith.constant 0 : index
    %664 = vector.load %arg7[%c0_463, %c0_464, %c0_465, %c0_466] : memref<1x1x8x64xf32, #tpu.memory_space<vmem>>, vector<1x1x8x64xf32>
    %665 = vector.shape_cast %664 : vector<1x1x8x64xf32> to vector<8x64xf32>
    %666 = vector.extract_strided_slice %3 {offsets = [32, 0], sizes = [1, 64], strides = [1, 1]} : vector<48x64xf32> to vector<1x64xf32>
    %667 = vector.extract_strided_slice %335 {offsets = [2, 3], sizes = [8, 64], strides = [1, 1]} : vector<10x128xf32> to vector<8x64xf32>
    %668 = vector.broadcast %666 : vector<1x64xf32> to vector<8x64xf32>
    %669 = arith.mulf %668, %667 : vector<8x64xf32>
    %670 = arith.addf %665, %669 : vector<8x64xf32>
    %c0_467 = arith.constant 0 : index
    %c0_468 = arith.constant 0 : index
    %c0_469 = arith.constant 0 : index
    %c0_470 = arith.constant 0 : index
    %671 = vector.load %arg7[%c0_467, %c0_468, %c0_469, %c0_470] : memref<1x1x8x64xf32, #tpu.memory_space<vmem>>, vector<1x1x8x64xf32>
    %672 = vector.shape_cast %671 : vector<1x1x8x64xf32> to vector<8x64xf32>
    %673 = vector.shape_cast %670 : vector<8x64xf32> to vector<1x1x8x64xf32>
    tpu.vector_store %arg7[%c0_467, %c0_468, %c0_469, %c0_470], %673 {strides = array<i32>} : memref<1x1x8x64xf32, #tpu.memory_space<vmem>>, vector<1x1x8x64xf32>,
    %c0_471 = arith.constant 0 : index
    %c0_472 = arith.constant 0 : index
    %c0_473 = arith.constant 0 : index
    %c0_474 = arith.constant 0 : index
    %674 = vector.load %arg7[%c0_471, %c0_472, %c0_473, %c0_474] : memref<1x1x8x64xf32, #tpu.memory_space<vmem>>, vector<1x1x8x64xf32>
    %675 = vector.shape_cast %674 : vector<1x1x8x64xf32> to vector<8x64xf32>
    %676 = vector.extract_strided_slice %3 {offsets = [33, 0], sizes = [1, 64], strides = [1, 1]} : vector<48x64xf32> to vector<1x64xf32>
    %677 = vector.extract_strided_slice %335 {offsets = [2, 4], sizes = [8, 64], strides = [1, 1]} : vector<10x128xf32> to vector<8x64xf32>
    %678 = vector.broadcast %676 : vector<1x64xf32> to vector<8x64xf32>
    %679 = arith.mulf %678, %677 : vector<8x64xf32>
    %680 = arith.addf %675, %679 : vector<8x64xf32>
    %c0_475 = arith.constant 0 : index
    %c0_476 = arith.constant 0 : index
    %c0_477 = arith.constant 0 : index
    %c0_478 = arith.constant 0 : index
    %681 = vector.load %arg7[%c0_475, %c0_476, %c0_477, %c0_478] : memref<1x1x8x64xf32, #tpu.memory_space<vmem>>, vector<1x1x8x64xf32>
    %682 = vector.shape_cast %681 : vector<1x1x8x64xf32> to vector<8x64xf32>
    %683 = vector.shape_cast %680 : vector<8x64xf32> to vector<1x1x8x64xf32>
    tpu.vector_store %arg7[%c0_475, %c0_476, %c0_477, %c0_478], %683 {strides = array<i32>} : memref<1x1x8x64xf32, #tpu.memory_space<vmem>>, vector<1x1x8x64xf32>,
    %c0_479 = arith.constant 0 : index
    %c0_480 = arith.constant 0 : index
    %c0_481 = arith.constant 0 : index
    %c0_482 = arith.constant 0 : index
    %684 = vector.load %arg7[%c0_479, %c0_480, %c0_481, %c0_482] : memref<1x1x8x64xf32, #tpu.memory_space<vmem>>, vector<1x1x8x64xf32>
    %685 = vector.shape_cast %684 : vector<1x1x8x64xf32> to vector<8x64xf32>
    %686 = vector.extract_strided_slice %3 {offsets = [34, 0], sizes = [1, 64], strides = [1, 1]} : vector<48x64xf32> to vector<1x64xf32>
    %687 = vector.extract_strided_slice %335 {offsets = [2, 5], sizes = [8, 64], strides = [1, 1]} : vector<10x128xf32> to vector<8x64xf32>
    %688 = vector.broadcast %686 : vector<1x64xf32> to vector<8x64xf32>
    %689 = arith.mulf %688, %687 : vector<8x64xf32>
    %690 = arith.addf %685, %689 : vector<8x64xf32>
    %c0_483 = arith.constant 0 : index
    %c0_484 = arith.constant 0 : index
    %c0_485 = arith.constant 0 : index
    %c0_486 = arith.constant 0 : index
    %691 = vector.load %arg7[%c0_483, %c0_484, %c0_485, %c0_486] : memref<1x1x8x64xf32, #tpu.memory_space<vmem>>, vector<1x1x8x64xf32>
    %692 = vector.shape_cast %691 : vector<1x1x8x64xf32> to vector<8x64xf32>
    %693 = vector.shape_cast %690 : vector<8x64xf32> to vector<1x1x8x64xf32>
    tpu.vector_store %arg7[%c0_483, %c0_484, %c0_485, %c0_486], %693 {strides = array<i32>} : memref<1x1x8x64xf32, #tpu.memory_space<vmem>>, vector<1x1x8x64xf32>,
    %c0_487 = arith.constant 0 : index
    %c0_488 = arith.constant 0 : index
    %c0_489 = arith.constant 0 : index
    %c0_490 = arith.constant 0 : index
    %694 = vector.load %arg7[%c0_487, %c0_488, %c0_489, %c0_490] : memref<1x1x8x64xf32, #tpu.memory_space<vmem>>, vector<1x1x8x64xf32>
    %695 = vector.shape_cast %694 : vector<1x1x8x64xf32> to vector<8x64xf32>
    %696 = vector.extract_strided_slice %3 {offsets = [35, 0], sizes = [1, 64], strides = [1, 1]} : vector<48x64xf32> to vector<1x64xf32>
    %697 = vector.extract_strided_slice %335 {offsets = [2, 6], sizes = [8, 64], strides = [1, 1]} : vector<10x128xf32> to vector<8x64xf32>
    %698 = vector.broadcast %696 : vector<1x64xf32> to vector<8x64xf32>
    %699 = arith.mulf %698, %697 : vector<8x64xf32>
    %700 = arith.addf %695, %699 : vector<8x64xf32>
    %c0_491 = arith.constant 0 : index
    %c0_492 = arith.constant 0 : index
    %c0_493 = arith.constant 0 : index
    %c0_494 = arith.constant 0 : index
    %701 = vector.load %arg7[%c0_491, %c0_492, %c0_493, %c0_494] : memref<1x1x8x64xf32, #tpu.memory_space<vmem>>, vector<1x1x8x64xf32>
    %702 = vector.shape_cast %701 : vector<1x1x8x64xf32> to vector<8x64xf32>
    %703 = vector.shape_cast %700 : vector<8x64xf32> to vector<1x1x8x64xf32>
    tpu.vector_store %arg7[%c0_491, %c0_492, %c0_493, %c0_494], %703 {strides = array<i32>} : memref<1x1x8x64xf32, #tpu.memory_space<vmem>>, vector<1x1x8x64xf32>,
    %c0_495 = arith.constant 0 : index
    %c0_496 = arith.constant 0 : index
    %c0_497 = arith.constant 0 : index
    %c0_498 = arith.constant 0 : index
    %704 = vector.load %arg7[%c0_495, %c0_496, %c0_497, %c0_498] : memref<1x1x8x64xf32, #tpu.memory_space<vmem>>, vector<1x1x8x64xf32>
    %705 = vector.shape_cast %704 : vector<1x1x8x64xf32> to vector<8x64xf32>
    %706 = vector.extract_strided_slice %3 {offsets = [36, 0], sizes = [1, 64], strides = [1, 1]} : vector<48x64xf32> to vector<1x64xf32>
    %707 = vector.extract_strided_slice %335 {offsets = [2, 7], sizes = [8, 64], strides = [1, 1]} : vector<10x128xf32> to vector<8x64xf32>
    %708 = vector.broadcast %706 : vector<1x64xf32> to vector<8x64xf32>
    %709 = arith.mulf %708, %707 : vector<8x64xf32>
    %710 = arith.addf %705, %709 : vector<8x64xf32>
    %c0_499 = arith.constant 0 : index
    %c0_500 = arith.constant 0 : index
    %c0_501 = arith.constant 0 : index
    %c0_502 = arith.constant 0 : index
    %711 = vector.load %arg7[%c0_499, %c0_500, %c0_501, %c0_502] : memref<1x1x8x64xf32, #tpu.memory_space<vmem>>, vector<1x1x8x64xf32>
    %712 = vector.shape_cast %711 : vector<1x1x8x64xf32> to vector<8x64xf32>
    %713 = vector.shape_cast %710 : vector<8x64xf32> to vector<1x1x8x64xf32>
    tpu.vector_store %arg7[%c0_499, %c0_500, %c0_501, %c0_502], %713 {strides = array<i32>} : memref<1x1x8x64xf32, #tpu.memory_space<vmem>>, vector<1x1x8x64xf32>,
    %c0_503 = arith.constant 0 : index
    %c0_504 = arith.constant 0 : index
    %c0_505 = arith.constant 0 : index
    %c0_506 = arith.constant 0 : index
    %714 = vector.load %arg7[%c0_503, %c0_504, %c0_505, %c0_506] : memref<1x1x8x64xf32, #tpu.memory_space<vmem>>, vector<1x1x8x64xf32>
    %715 = vector.shape_cast %714 : vector<1x1x8x64xf32> to vector<8x64xf32>
    %716 = vector.extract_strided_slice %3 {offsets = [37, 0], sizes = [1, 64], strides = [1, 1]} : vector<48x64xf32> to vector<1x64xf32>
    %717 = vector.extract_strided_slice %335 {offsets = [2, 8], sizes = [8, 64], strides = [1, 1]} : vector<10x128xf32> to vector<8x64xf32>
    %718 = vector.broadcast %716 : vector<1x64xf32> to vector<8x64xf32>
    %719 = arith.mulf %718, %717 : vector<8x64xf32>
    %720 = arith.addf %715, %719 : vector<8x64xf32>
    %c0_507 = arith.constant 0 : index
    %c0_508 = arith.constant 0 : index
    %c0_509 = arith.constant 0 : index
    %c0_510 = arith.constant 0 : index
    %721 = vector.load %arg7[%c0_507, %c0_508, %c0_509, %c0_510] : memref<1x1x8x64xf32, #tpu.memory_space<vmem>>, vector<1x1x8x64xf32>
    %722 = vector.shape_cast %721 : vector<1x1x8x64xf32> to vector<8x64xf32>
    %723 = vector.shape_cast %720 : vector<8x64xf32> to vector<1x1x8x64xf32>
    tpu.vector_store %arg7[%c0_507, %c0_508, %c0_509, %c0_510], %723 {strides = array<i32>} : memref<1x1x8x64xf32, #tpu.memory_space<vmem>>, vector<1x1x8x64xf32>,
    %c0_511 = arith.constant 0 : index
    %c0_512 = arith.constant 0 : index
    %c0_513 = arith.constant 0 : index
    %c0_514 = arith.constant 0 : index
    %724 = vector.load %arg7[%c0_511, %c0_512, %c0_513, %c0_514] : memref<1x1x8x64xf32, #tpu.memory_space<vmem>>, vector<1x1x8x64xf32>
    %725 = vector.shape_cast %724 : vector<1x1x8x64xf32> to vector<8x64xf32>
    %726 = vector.extract_strided_slice %3 {offsets = [38, 0], sizes = [1, 64], strides = [1, 1]} : vector<48x64xf32> to vector<1x64xf32>
    %727 = vector.extract_strided_slice %335 {offsets = [2, 9], sizes = [8, 64], strides = [1, 1]} : vector<10x128xf32> to vector<8x64xf32>
    %728 = vector.broadcast %726 : vector<1x64xf32> to vector<8x64xf32>
    %729 = arith.mulf %728, %727 : vector<8x64xf32>
    %730 = arith.addf %725, %729 : vector<8x64xf32>
    %c0_515 = arith.constant 0 : index
    %c0_516 = arith.constant 0 : index
    %c0_517 = arith.constant 0 : index
    %c0_518 = arith.constant 0 : index
    %731 = vector.load %arg7[%c0_515, %c0_516, %c0_517, %c0_518] : memref<1x1x8x64xf32, #tpu.memory_space<vmem>>, vector<1x1x8x64xf32>
    %732 = vector.shape_cast %731 : vector<1x1x8x64xf32> to vector<8x64xf32>
    %733 = vector.shape_cast %730 : vector<8x64xf32> to vector<1x1x8x64xf32>
    tpu.vector_store %arg7[%c0_515, %c0_516, %c0_517, %c0_518], %733 {strides = array<i32>} : memref<1x1x8x64xf32, #tpu.memory_space<vmem>>, vector<1x1x8x64xf32>,
    %c0_519 = arith.constant 0 : index
    %c0_520 = arith.constant 0 : index
    %c0_521 = arith.constant 0 : index
    %c0_522 = arith.constant 0 : index
    %734 = vector.load %arg7[%c0_519, %c0_520, %c0_521, %c0_522] : memref<1x1x8x64xf32, #tpu.memory_space<vmem>>, vector<1x1x8x64xf32>
    %735 = vector.shape_cast %734 : vector<1x1x8x64xf32> to vector<8x64xf32>
    %736 = vector.extract_strided_slice %3 {offsets = [39, 0], sizes = [1, 64], strides = [1, 1]} : vector<48x64xf32> to vector<1x64xf32>
    %737 = vector.extract_strided_slice %335 {offsets = [2, 10], sizes = [8, 64], strides = [1, 1]} : vector<10x128xf32> to vector<8x64xf32>
    %738 = vector.broadcast %736 : vector<1x64xf32> to vector<8x64xf32>
    %739 = arith.mulf %738, %737 : vector<8x64xf32>
    %740 = arith.addf %735, %739 : vector<8x64xf32>
    %c0_523 = arith.constant 0 : index
    %c0_524 = arith.constant 0 : index
    %c0_525 = arith.constant 0 : index
    %c0_526 = arith.constant 0 : index
    %741 = vector.load %arg7[%c0_523, %c0_524, %c0_525, %c0_526] : memref<1x1x8x64xf32, #tpu.memory_space<vmem>>, vector<1x1x8x64xf32>
    %742 = vector.shape_cast %741 : vector<1x1x8x64xf32> to vector<8x64xf32>
    %743 = vector.shape_cast %740 : vector<8x64xf32> to vector<1x1x8x64xf32>
    tpu.vector_store %arg7[%c0_523, %c0_524, %c0_525, %c0_526], %743 {strides = array<i32>} : memref<1x1x8x64xf32, #tpu.memory_space<vmem>>, vector<1x1x8x64xf32>,
    %c0_527 = arith.constant 0 : index
    %c0_528 = arith.constant 0 : index
    %c0_529 = arith.constant 0 : index
    %c0_530 = arith.constant 0 : index
    %744 = vector.load %arg7[%c0_527, %c0_528, %c0_529, %c0_530] : memref<1x1x8x64xf32, #tpu.memory_space<vmem>>, vector<1x1x8x64xf32>
    %745 = vector.shape_cast %744 : vector<1x1x8x64xf32> to vector<8x64xf32>
    %746 = vector.extract_strided_slice %3 {offsets = [40, 0], sizes = [1, 64], strides = [1, 1]} : vector<48x64xf32> to vector<1x64xf32>
    %747 = vector.extract_strided_slice %335 {offsets = [2, 11], sizes = [8, 64], strides = [1, 1]} : vector<10x128xf32> to vector<8x64xf32>
    %748 = vector.broadcast %746 : vector<1x64xf32> to vector<8x64xf32>
    %749 = arith.mulf %748, %747 : vector<8x64xf32>
    %750 = arith.addf %745, %749 : vector<8x64xf32>
    %c0_531 = arith.constant 0 : index
    %c0_532 = arith.constant 0 : index
    %c0_533 = arith.constant 0 : index
    %c0_534 = arith.constant 0 : index
    %751 = vector.load %arg7[%c0_531, %c0_532, %c0_533, %c0_534] : memref<1x1x8x64xf32, #tpu.memory_space<vmem>>, vector<1x1x8x64xf32>
    %752 = vector.shape_cast %751 : vector<1x1x8x64xf32> to vector<8x64xf32>
    %753 = vector.shape_cast %750 : vector<8x64xf32> to vector<1x1x8x64xf32>
    tpu.vector_store %arg7[%c0_531, %c0_532, %c0_533, %c0_534], %753 {strides = array<i32>} : memref<1x1x8x64xf32, #tpu.memory_space<vmem>>, vector<1x1x8x64xf32>,
    %c0_535 = arith.constant 0 : index
    %c0_536 = arith.constant 0 : index
    %c0_537 = arith.constant 0 : index
    %c0_538 = arith.constant 0 : index
    %754 = vector.load %arg7[%c0_535, %c0_536, %c0_537, %c0_538] : memref<1x1x8x64xf32, #tpu.memory_space<vmem>>, vector<1x1x8x64xf32>
    %755 = vector.shape_cast %754 : vector<1x1x8x64xf32> to vector<8x64xf32>
    %756 = vector.extract_strided_slice %3 {offsets = [41, 0], sizes = [1, 64], strides = [1, 1]} : vector<48x64xf32> to vector<1x64xf32>
    %757 = vector.extract_strided_slice %335 {offsets = [2, 12], sizes = [8, 64], strides = [1, 1]} : vector<10x128xf32> to vector<8x64xf32>
    %758 = vector.broadcast %756 : vector<1x64xf32> to vector<8x64xf32>
    %759 = arith.mulf %758, %757 : vector<8x64xf32>
    %760 = arith.addf %755, %759 : vector<8x64xf32>
    %c0_539 = arith.constant 0 : index
    %c0_540 = arith.constant 0 : index
    %c0_541 = arith.constant 0 : index
    %c0_542 = arith.constant 0 : index
    %761 = vector.load %arg7[%c0_539, %c0_540, %c0_541, %c0_542] : memref<1x1x8x64xf32, #tpu.memory_space<vmem>>, vector<1x1x8x64xf32>
    %762 = vector.shape_cast %761 : vector<1x1x8x64xf32> to vector<8x64xf32>
    %763 = vector.shape_cast %760 : vector<8x64xf32> to vector<1x1x8x64xf32>
    tpu.vector_store %arg7[%c0_539, %c0_540, %c0_541, %c0_542], %763 {strides = array<i32>} : memref<1x1x8x64xf32, #tpu.memory_space<vmem>>, vector<1x1x8x64xf32>,
    %c0_543 = arith.constant 0 : index
    %c0_544 = arith.constant 0 : index
    %c0_545 = arith.constant 0 : index
    %c0_546 = arith.constant 0 : index
    %764 = vector.load %arg7[%c0_543, %c0_544, %c0_545, %c0_546] : memref<1x1x8x64xf32, #tpu.memory_space<vmem>>, vector<1x1x8x64xf32>
    %765 = vector.shape_cast %764 : vector<1x1x8x64xf32> to vector<8x64xf32>
    %766 = vector.extract_strided_slice %3 {offsets = [42, 0], sizes = [1, 64], strides = [1, 1]} : vector<48x64xf32> to vector<1x64xf32>
    %767 = vector.extract_strided_slice %335 {offsets = [2, 13], sizes = [8, 64], strides = [1, 1]} : vector<10x128xf32> to vector<8x64xf32>
    %768 = vector.broadcast %766 : vector<1x64xf32> to vector<8x64xf32>
    %769 = arith.mulf %768, %767 : vector<8x64xf32>
    %770 = arith.addf %765, %769 : vector<8x64xf32>
    %c0_547 = arith.constant 0 : index
    %c0_548 = arith.constant 0 : index
    %c0_549 = arith.constant 0 : index
    %c0_550 = arith.constant 0 : index
    %771 = vector.load %arg7[%c0_547, %c0_548, %c0_549, %c0_550] : memref<1x1x8x64xf32, #tpu.memory_space<vmem>>, vector<1x1x8x64xf32>
    %772 = vector.shape_cast %771 : vector<1x1x8x64xf32> to vector<8x64xf32>
    %773 = vector.shape_cast %770 : vector<8x64xf32> to vector<1x1x8x64xf32>
    tpu.vector_store %arg7[%c0_547, %c0_548, %c0_549, %c0_550], %773 {strides = array<i32>} : memref<1x1x8x64xf32, #tpu.memory_space<vmem>>, vector<1x1x8x64xf32>,
    %c0_551 = arith.constant 0 : index
    %c0_552 = arith.constant 0 : index
    %c0_553 = arith.constant 0 : index
    %c0_554 = arith.constant 0 : index
    %774 = vector.load %arg7[%c0_551, %c0_552, %c0_553, %c0_554] : memref<1x1x8x64xf32, #tpu.memory_space<vmem>>, vector<1x1x8x64xf32>
    %775 = vector.shape_cast %774 : vector<1x1x8x64xf32> to vector<8x64xf32>
    %776 = vector.extract_strided_slice %3 {offsets = [43, 0], sizes = [1, 64], strides = [1, 1]} : vector<48x64xf32> to vector<1x64xf32>
    %777 = vector.extract_strided_slice %335 {offsets = [2, 14], sizes = [8, 64], strides = [1, 1]} : vector<10x128xf32> to vector<8x64xf32>
    %778 = vector.broadcast %776 : vector<1x64xf32> to vector<8x64xf32>
    %779 = arith.mulf %778, %777 : vector<8x64xf32>
    %780 = arith.addf %775, %779 : vector<8x64xf32>
    %c0_555 = arith.constant 0 : index
    %c0_556 = arith.constant 0 : index
    %c0_557 = arith.constant 0 : index
    %c0_558 = arith.constant 0 : index
    %781 = vector.load %arg7[%c0_555, %c0_556, %c0_557, %c0_558] : memref<1x1x8x64xf32, #tpu.memory_space<vmem>>, vector<1x1x8x64xf32>
    %782 = vector.shape_cast %781 : vector<1x1x8x64xf32> to vector<8x64xf32>
    %783 = vector.shape_cast %780 : vector<8x64xf32> to vector<1x1x8x64xf32>
    tpu.vector_store %arg7[%c0_555, %c0_556, %c0_557, %c0_558], %783 {strides = array<i32>} : memref<1x1x8x64xf32, #tpu.memory_space<vmem>>, vector<1x1x8x64xf32>,
    %c0_559 = arith.constant 0 : index
    %c0_560 = arith.constant 0 : index
    %c0_561 = arith.constant 0 : index
    %c0_562 = arith.constant 0 : index
    %784 = vector.load %arg7[%c0_559, %c0_560, %c0_561, %c0_562] : memref<1x1x8x64xf32, #tpu.memory_space<vmem>>, vector<1x1x8x64xf32>
    %785 = vector.shape_cast %784 : vector<1x1x8x64xf32> to vector<8x64xf32>
    %786 = vector.extract_strided_slice %3 {offsets = [44, 0], sizes = [1, 64], strides = [1, 1]} : vector<48x64xf32> to vector<1x64xf32>
    %787 = vector.extract_strided_slice %335 {offsets = [2, 15], sizes = [8, 64], strides = [1, 1]} : vector<10x128xf32> to vector<8x64xf32>
    %788 = vector.broadcast %786 : vector<1x64xf32> to vector<8x64xf32>
    %789 = arith.mulf %788, %787 : vector<8x64xf32>
    %790 = arith.addf %785, %789 : vector<8x64xf32>
    %c0_563 = arith.constant 0 : index
    %c0_564 = arith.constant 0 : index
    %c0_565 = arith.constant 0 : index
    %c0_566 = arith.constant 0 : index
    %791 = vector.load %arg7[%c0_563, %c0_564, %c0_565, %c0_566] : memref<1x1x8x64xf32, #tpu.memory_space<vmem>>, vector<1x1x8x64xf32>
    %792 = vector.shape_cast %791 : vector<1x1x8x64xf32> to vector<8x64xf32>
    %793 = vector.shape_cast %790 : vector<8x64xf32> to vector<1x1x8x64xf32>
    tpu.vector_store %arg7[%c0_563, %c0_564, %c0_565, %c0_566], %793 {strides = array<i32>} : memref<1x1x8x64xf32, #tpu.memory_space<vmem>>, vector<1x1x8x64xf32>,
    return
  }
  func.func @transform_0(%arg0: i32, %arg1: i32) -> (i32, i32, i32, i32) {
    %c0_i32 = arith.constant 0 : i32
    %c0_i32_0 = arith.constant 0 : i32
    %c0_i32_1 = arith.constant 0 : i32
    return %arg0, %arg1, %c0_i32, %c0_i32_0 : i32, i32, i32, i32
  }
  func.func @transform_1(%arg0: i32, %arg1: i32) -> (i32, i32) {
    %c0_i32 = arith.constant 0 : i32
    %c0_i32_0 = arith.constant 0 : i32
    %c0_i32_1 = arith.constant 0 : i32
    return %c0_i32, %c0_i32_0 : i32, i32
  }
  func.func @transform_2(%arg0: i32, %arg1: i32) -> (i32, i32) {
    %c0_i32 = arith.constant 0 : i32
    %c0_i32_0 = arith.constant 0 : i32
    %c0_i32_1 = arith.constant 0 : i32
    return %c0_i32, %c0_i32_0 : i32, i32
  }
  func.func @transform_3(%arg0: i32, %arg1: i32) -> (i32, i32) {
    %c0_i32 = arith.constant 0 : i32
    %c0_i32_0 = arith.constant 0 : i32
    %c0_i32_1 = arith.constant 0 : i32
    return %c0_i32, %c0_i32_0 : i32, i32
  }
  func.func @transform_4(%arg0: i32, %arg1: i32) -> (i32, i32) {
    %c0_i32 = arith.constant 0 : i32
    %c0_i32_0 = arith.constant 0 : i32
    %c0_i32_1 = arith.constant 0 : i32
    return %c0_i32, %c0_i32_0 : i32, i32
  }
  func.func @transform_5(%arg0: i32, %arg1: i32) -> (i32, i32, i32, i32) {
    %c0_i32 = arith.constant 0 : i32
    %c0_i32_0 = arith.constant 0 : i32
    %c0_i32_1 = arith.constant 0 : i32
    return %arg0, %arg1, %c0_i32, %c0_i32_0 : i32, i32, i32, i32
  }
}

</mosaic_0001>

<bundles_post_ra>
// kernel: tile.13
= control target key start
LH: loop header
LB: loop body
LE: loop exit
PB: predicated region body
PF: predicated region fallthrough
CT: control target
= control target key end

     0   :  { %s28_s0 = inlined_call_operand.vmem [shape: f32[4], index: 0, kind: input, shape index: {}]   ;;  %s29_s1 = inlined_call_operand.vmem [shape: f32[16,4], index: 1, kind: output, shape index: {}]  }
   0x1   :  { %v4_v0 = vld [vmem:[%s28_s0] ss:$0 sm:$0xff] }
   0x2   :  { %5 = vst [vmem:[%s29_s1] sm:$0xff] %v4_v0  ;;  %8 = vst [vmem:[%s29_s1 + $0x8] sm:$0xff] %v4_v0 }

// kernel: tile.14
= control target key start
LH: loop header
LB: loop body
LE: loop exit
PB: predicated region body
PF: predicated region fallthrough
CT: control target
= control target key end

     0   :  { %s131_s10 = smov 60   ;;  %s132_s11 = smov 52   ;;  %vm3_vm0 = vcmask 31744   ;;  %vm9_vm1 = vcmask 523744   ;;  %vm15_vm2 = vcmask 490944   ;;  %vm21_vm3 = vcmask 458144   ;;  %s207_s0 = inlined_call_operand.vmem [shape: f32[16,4], index: 0, kind: input, shape index: {}]   ;;  %s208_s1 = inlined_call_operand.vmem [shape: f32[1,64], index: 1, kind: output, shape index: {}]  }
   0x1   :  { %v101_v0 = vld [vmem:[%s207_s0 + $0xf] sm:$0x1]   ;;  %v103_v1 = vld [vmem:[%s207_s0 + $0xd] sm:$0x1]   ;;  %v102_v2 = vld [vmem:[%s207_s0 + $0xe] sm:$0x1]  }
   0x2   :  { %7 = vrot.lane.b32.xlu0 %v101_v0, %s131_s10  ;;  %19 = vrot.lane.b32.xlu1 %v103_v1, %s132_s11  ;;  %v104_v3 = vld [vmem:[%s207_s0 + $0xc] sm:$0x1]   ;;  %s133_s16 = smov 56   ;;  %s134_s17 = smov 48   ;;  %v105_v4 = vld [vmem:[%s207_s0 + $0xb] sm:$0x1]  }
   0x3   :  { %v106_v5 = vld [vmem:[%s207_s0 + $0xa] sm:$0x1]   ;;  %v2_v6 = vld [vmem:[%s207_s0] sm:$0x1]   ;;  %s135_s24 = smov 44   ;;  %s136_s25 = smov 40  }
   0x4   :  { %4 = vst.msk [vmem:[#allocation0] sm:$0x1] %vm3_vm0, %v2_v6   ;;  %v107_v7 = vld [vmem:[%s207_s0 + $0x9] sm:$0x1]   ;;  %v108_v8 = vld [vmem:[%s207_s0 + $0x8] sm:$0x1]  }
   0x5   :  { %s137_s30 = smov 36   ;;  %s138_s2 = smov 32   ;;  %v109_v9 = vld [vmem:[%s207_s0 + $0x7] sm:$0x1]   ;;  %v110_v10 = vld [vmem:[%s207_s0 + $0x6] sm:$0x1]  }
   0x6   :  { %13 = vrot.lane.b32.xlu0 %v102_v2, %s133_s16  ;;  %25 = vrot.lane.b32.xlu1 %v104_v3, %s134_s17  ;;  %s139_s7 = smov 28   ;;  %s140_s8 = smov 24   ;;  %v111_v11 = vld [vmem:[%s207_s0 + $0x5] sm:$0x1]   ;;  %v112_v12 = vld [vmem:[%s207_s0 + $0x4] sm:$0x1]  }
   0x7   :  { %s141_s13 = smov 20   ;;  %s142_s14 = smov 16   ;;  %v113_v13 = vld [vmem:[%s207_s0 + $0x3] sm:$0x1]   ;;  %v114_v14 = vld [vmem:[%s207_s0 + $0x2] sm:$0x1]  }
   0x8   :  { %s143_s19 = smov 12   ;;  %s144_s20 = smov 8   ;;  %v115_v15 = vld [vmem:[%s207_s0 + $0x1] sm:$0x1]   ;;  %vm27_vm4 = vcmask 425344   ;;  %vm33_vm5 = vcmask 392544  }
   0x9   :  { %s145_s0 = smov 4   ;;  %vm39_vm6 = vcmask 359744   ;;  %vm45_vm7 = vcmask 326944   ;;  %vm51_vm8 = vcmask 294144   ;;  %vm57_vm9 = vcmask 261344  }
   0xa   :  { %31 = vrot.lane.b32.xlu0 %v105_v4, %s135_s24  ;;  %37 = vrot.lane.b32.xlu1 %v106_v5, %s136_s25  ;;  %vm63_vm10 = vcmask 228544   ;;  %vm69_vm11 = vcmask 195744   ;;  %vm75_vm12 = vcmask 162944   ;;  %vm81_vm13 = vcmask 130144  }
   0xb   :  { %vm87_vm14 = vcmask 97344   ;;  %vm93_vm15 = vcmask 64544  }
   0xe   :  { %43 = vrot.lane.b32.xlu0 %v107_v7, %s137_s30  ;;  %49 = vrot.lane.b32.xlu1 %v108_v8, %s138_s2 }
  0x12   :  { %55 = vrot.lane.b32.xlu0 %v109_v9, %s139_s7  ;;  %61 = vrot.lane.b32.xlu1 %v110_v10, %s140_s8 }
  0x16   :  { %67 = vrot.lane.b32.xlu0 %v111_v11, %s141_s13  ;;  %73 = vrot.lane.b32.xlu1 %v112_v12, %s142_s14 }
  0x1a   :  { %79 = vrot.lane.b32.xlu0 %v113_v13, %s143_s19  ;;  %85 = vrot.lane.b32.xlu1 %v114_v14, %s144_s20 }
  0x1e   :  { %91 = vrot.lane.b32.xlu0 %v115_v15, %s145_s0 }
  0x74   :  { %v8_v16 = vpop.permute.xlu0 %7   ;;  %v20_v17 = vpop.permute.xlu1 %19  }
  0x75   :  { %10 = vst.msk [vmem:[#allocation0] sm:$0x1] %vm9_vm1, %v8_v16  }
  0x78   :  { %v14_v18 = vpop.permute.xlu0 %13   ;;  %v26_v19 = vpop.permute.xlu1 %25  }
  0x79   :  { %16 = vst.msk [vmem:[#allocation0] sm:$0x1] %vm15_vm2, %v14_v18  }
  0x7a   :  { %22 = vst.msk [vmem:[#allocation0] sm:$0x1] %vm21_vm3, %v20_v17  }
  0x7b   :  { %28 = vst.msk [vmem:[#allocation0] sm:$0x1] %vm27_vm4, %v26_v19  }
  0x7c   :  { %v32_v20 = vpop.permute.xlu0 %31   ;;  %v38_v21 = vpop.permute.xlu1 %37  }
  0x7d   :  { %34 = vst.msk [vmem:[#allocation0] sm:$0x1] %vm33_vm5, %v32_v20  }
  0x7e   :  { %40 = vst.msk [vmem:[#allocation0] sm:$0x1] %vm39_vm6, %v38_v21  }
  0x80   :  { %v44_v22 = vpop.permute.xlu0 %43   ;;  %v50_v23 = vpop.permute.xlu1 %49  }
  0x81   :  { %46 = vst.msk [vmem:[#allocation0] sm:$0x1] %vm45_vm7, %v44_v22  }
  0x82   :  { %52 = vst.msk [vmem:[#allocation0] sm:$0x1] %vm51_vm8, %v50_v23  }
  0x84   :  { %v56_v24 = vpop.permute.xlu0 %55   ;;  %v62_v25 = vpop.permute.xlu1 %61  }
  0x85   :  { %58 = vst.msk [vmem:[#allocation0] sm:$0x1] %vm57_vm9, %v56_v24  }
  0x86   :  { %64 = vst.msk [vmem:[#allocation0] sm:$0x1] %vm63_vm10, %v62_v25  }
  0x88   :  { %v68_v26 = vpop.permute.xlu0 %67   ;;  %v74_v27 = vpop.permute.xlu1 %73  }
  0x89   :  { %70 = vst.msk [vmem:[#allocation0] sm:$0x1] %vm69_vm11, %v68_v26  }
  0x8a   :  { %76 = vst.msk [vmem:[#allocation0] sm:$0x1] %vm75_vm12, %v74_v27  }
  0x8c   :  { %v80_v28 = vpop.permute.xlu0 %79   ;;  %v86_v29 = vpop.permute.xlu1 %85  }
  0x8d   :  { %82 = vst.msk [vmem:[#allocation0] sm:$0x1] %vm81_vm13, %v80_v28  }
  0x8e   :  { %88 = vst.msk [vmem:[#allocation0] sm:$0x1] %vm87_vm14, %v86_v29  }
  0x90   :  { %v92_v30 = vpop.permute.xlu0 %91  }
  0x91   :  { %94 = vst.msk [vmem:[#allocation0] sm:$0x1] %vm93_vm15, %v92_v30  }
  0x98   :  { %v98_v31 = vld [vmem:[#allocation0] sm:$0x1] }
  0x99   :  { %100 = vst [vmem:[%s208_s1] sm:$0x1] %v98_v31 }

</bundles_post_ra>
